<compile_context>
chip_gen: v7x
topology: tpu7x:2x2x1
jax: 0.10.0
libtpu: 0.0.40
codegen_flags: <defaults>
</compile_context>

<pallas_src>
import functools

import jax
import jax.numpy as jnp
from jax.experimental import pallas as pl
from jax.experimental.pallas import tpu as pltpu


def _attention_kernel(x_ref, wqkv_ref, wo_ref, bo_ref, o_ref, ov_ref, *,
                      heads, dim_head, scale, n_valid):
    # x_ref    : (1, Np, D)        bf16  current batch element (Np = padded N)
    # wqkv_ref : (D, 3*H*Dh)       bf16  resident QKV projection weights
    # wo_ref   : (H*Dh, D)         bf16  resident output projection weights
    # bo_ref   : (1, D)            f32   resident output bias
    # o_ref    : (1, Np, D)              output block (written once)
    # ov_ref   : (Np, H*Dh)        bf16  VMEM scratch for concatenated heads
    inner = heads * dim_head
    n_pad = x_ref.shape[1]

    x = x_ref[0]                                                  # (Np, D) bf16

    # Single lane-dense QKV projection on the MXU (bf16 in / f32 acc).
    qkv = jnp.dot(x, wqkv_ref[...],
                  preferred_element_type=jnp.float32)             # (Np, 3*inner)

    need_mask = n_valid < n_pad
    if need_mask:
        # Hoisted out of the head loop (broadcast is not CSE'd by JAX).
        col_ids = jax.lax.broadcasted_iota(jnp.int32, (n_pad, n_pad), 1)
        key_mask = col_ids < n_valid

    for h in range(heads):                                        # static unroll
        lo = h * dim_head
        hi = lo + dim_head
        q = qkv[:, lo:hi]                                         # (Np, Dh) f32
        k = qkv[:, inner + lo:inner + hi]
        v = qkv[:, 2 * inner + lo:2 * inner + hi]

        # Fold the softmax scale into the narrow (Np, Dh) query tile.
        q_bf = (q * scale).astype(jnp.bfloat16)
        k_bf = k.astype(jnp.bfloat16)
        v_bf = v.astype(jnp.bfloat16)

        # scores = q @ k^T  (f32 accumulation, no explicit transpose op).
        dots = jax.lax.dot_general(
            q_bf, k_bf, (((1,), (1,)), ((), ())),
            preferred_element_type=jnp.float32)                   # (Np, Np)
        if need_mask:
            dots = jnp.where(key_mask, dots, -1e30)               # mask pad keys

        # Unnormalized softmax; normalization deferred to the (Np, Dh) result.
        m = jnp.max(dots, axis=-1, keepdims=True)                 # (Np, 1) f32
        e = jnp.exp(dots - m)                                     # (Np, Np) f32
        denom = jnp.sum(e, axis=-1, keepdims=True)                # (Np, 1) f32
        ov = jnp.dot(e.astype(jnp.bfloat16), v_bf,
                     preferred_element_type=jnp.float32)          # (Np, Dh)
        out_h = ov * pl.reciprocal(denom, approx=True)            # (Np, Dh) f32

        ov_ref[:, lo:hi] = out_h.astype(jnp.bfloat16)             # static lane slice

    # One lane-dense output projection + bias for all heads.
    proj = jnp.dot(ov_ref[...], wo_ref[...],
                   preferred_element_type=jnp.float32)            # (Np, D)
    o_ref[0] = (proj + bo_ref[...]).astype(o_ref.dtype)


def attention_pallas(x, w_qkv, w_out, b_out, *, heads, dim_head):
    B, N, D = x.shape
    inner = heads * dim_head
    assert w_qkv.shape == (D, 3 * inner)
    assert w_out.shape == (inner, D)
    scale = float(dim_head) ** -0.5

    # Pad N to a multiple of 128 for lane-dense scores / outputs.
    n_pad = ((N + 127) // 128) * 128

    # Wrapper-side preprocessing (one-time): bf16 activations and weights.
    x_bf = x.astype(jnp.bfloat16)
    if n_pad != N:
        x_bf = jnp.pad(x_bf, ((0, 0), (0, n_pad - N), (0, 0)))
    wqkv_bf = w_qkv.astype(jnp.bfloat16)
    wo_bf = w_out.astype(jnp.bfloat16)
    bo = b_out.reshape(1, D).astype(jnp.float32)

    kernel = functools.partial(_attention_kernel, heads=heads,
                               dim_head=dim_head, scale=scale, n_valid=N)

    out = pl.pallas_call(
        kernel,
        out_shape=jax.ShapeDtypeStruct((B, n_pad, D), x.dtype),
        grid_spec=pltpu.PrefetchScalarGridSpec(
            num_scalar_prefetch=0,
            grid=(B,),
            in_specs=[
                # x: one batch element per grid step.
                pl.BlockSpec((1, n_pad, D), lambda b: (b, 0, 0)),
                # Weights / bias: constant index maps -> DMA'd once, VMEM-resident.
                pl.BlockSpec((D, 3 * inner), lambda b: (0, 0)),
                pl.BlockSpec((inner, D), lambda b: (0, 0)),
                pl.BlockSpec((1, D), lambda b: (0, 0)),
            ],
            out_specs=pl.BlockSpec((1, n_pad, D), lambda b: (b, 0, 0)),
            scratch_shapes=[pltpu.VMEM((n_pad, inner), jnp.bfloat16)],
        ),
        compiler_params=pltpu.CompilerParams(
            dimension_semantics=("parallel",),
            vmem_limit_bytes=48 * 1024 * 1024),
    )(x_bf, wqkv_bf, wo_bf, bo)

    if n_pad != N:
        out = out[:, :N, :]
    return out


def attention_reference(x, w_qkv, w_out, b_out, *, heads, dim_head):
    """Pure-JAX f32 reference mirroring the PyTorch forward exactly."""
    B, N, D = x.shape
    inner = heads * dim_head
    scale = float(dim_head) ** -0.5
    qkv = jnp.einsum('bnd,de->bne', x, w_qkv)
    q, k, v = jnp.split(qkv, 3, axis=-1)

    def to_heads(t):  # 'b n (h d) -> b h n d'
        return t.reshape(B, N, heads, dim_head).transpose(0, 2, 1, 3)

    q, k, v = map(to_heads, (q, k, v))
    dots = jnp.einsum('bhnd,bhmd->bhnm', q, k) * scale
    attn = jax.nn.softmax(dots, axis=-1)
    out = jnp.einsum('bhnm,bhmd->bhnd', attn, v)
    out = out.transpose(0, 2, 1, 3).reshape(B, N, inner)  # 'b h n d -> b n (h d)'
    return jnp.einsum('bni,id->bnd', out, w_out) + b_out


if __name__ == "__main__":
    # Small, module-consistent shapes (N < 128 also exercises the pad/mask path).
    B, N, D = 2, 8, 32
    heads, dim_head = 4, 8
    inner = heads * dim_head

    key = jax.random.PRNGKey(0)
    kx, kqkv, kout, kb = jax.random.split(key, 4)
    x = jax.random.normal(kx, (B, N, D), dtype=jnp.float32)
    # Deterministic synthetic weights (shapes from the nn.Linear definitions).
    w_qkv = jax.random.normal(kqkv, (D, 3 * inner), dtype=jnp.float32) * 0.05
    w_out = jax.random.normal(kout, (inner, D), dtype=jnp.float32) * 0.05
    b_out = jax.random.normal(kb, (D,), dtype=jnp.float32) * 0.05

    y = attention_pallas(x, w_qkv, w_out, b_out, heads=heads, dim_head=dim_head)
    y = jax.block_until_ready(y)

    y_ref = attention_reference(x, w_qkv, w_out, b_out,
                                heads=heads, dim_head=dim_head)
    assert y.shape == (B, N, D)
    # Tolerance loosened vs pure f32: MXU inputs are bf16, the concatenated
    # head outputs are stored bf16, and the softmax reciprocal uses the approx
    # EUP path (all accumulation / statistics stay f32).
    assert jnp.allclose(y, y_ref, atol=2e-2, rtol=2e-2), "mismatch vs reference"

    print("KERNEL_OK")
</pallas_src>

<mosaic_0001>
module attributes {stable_mosaic.version = 11 : i64} {
  func.func @_attention_kernel(%arg0: i32, %arg1: memref<1x128x32xbf16, #tpu.memory_space<vmem>>, %arg2: memref<32x96xbf16, #tpu.memory_space<vmem>>, %arg3: memref<32x32xbf16, #tpu.memory_space<vmem>>, %arg4: memref<1x32xf32, #tpu.memory_space<vmem>>, %arg5: memref<1x128x32xf32, #tpu.memory_space<vmem>>, %arg6: memref<128x32xbf16, #tpu.memory_space<vmem>>) attributes {dimension_semantics = [#tpu.dimension_semantics<parallel>], iteration_bounds = array<i64: 2>, scalar_prefetch = 0 : i64, scratch_operands = 1 : i64, tpu.core_type = #tpu.core_type<tc>, window_params = [{transform_indices = @transform_0, window_bounds = array<i64: 1, 128, 32>}, {pipeline_mode = #tpu.pipeline_mode<synchronous>, transform_indices = @transform_1, window_bounds = array<i64: 32, 96>}, {pipeline_mode = #tpu.pipeline_mode<synchronous>, transform_indices = @transform_2, window_bounds = array<i64: 32, 32>}, {pipeline_mode = #tpu.pipeline_mode<synchronous>, transform_indices = @transform_3, window_bounds = array<i64: 1, 32>}, {transform_indices = @transform_4, window_bounds = array<i64: 1, 128, 32>}]} {
    %c0 = arith.constant 0 : index
    %c0_0 = arith.constant 0 : index
    %c0_1 = arith.constant 0 : index
    %0 = vector.load %arg1[%c0, %c0_0, %c0_1] : memref<1x128x32xbf16, #tpu.memory_space<vmem>>, vector<1x128x32xbf16>
    %1 = vector.shape_cast %0 : vector<1x128x32xbf16> to vector<128x32xbf16>
    %c0_2 = arith.constant 0 : index
    %c0_3 = arith.constant 0 : index
    %2 = vector.load %arg2[%c0_2, %c0_3] : memref<32x96xbf16, #tpu.memory_space<vmem>>, vector<32x96xbf16>
    %cst = arith.constant dense<0.000000e+00> : vector<128x96xf32>
    %3 = tpu.matmul %1, %2, %cst {dimension_numbers = #tpu.dot_dimension_numbers<[1], [0], [0], [1], [0, 0, 1, 1], [], []>} : vector<128x32xbf16>, vector<32x96xbf16>, vector<128x96xf32> -> vector<128x96xf32>
    %4 = tpu.iota {dimensions = array<i32: 1>} : vector<128x128xi32>
    %c8_i32 = arith.constant 8 : i32
    %5 = vector.broadcast %c8_i32 : i32 to vector<128x128xi32>
    %6 = arith.cmpi slt, %4, %5 : vector<128x128xi32>
    %7 = vector.extract_strided_slice %3 {offsets = [0, 0], sizes = [128, 8], strides = [1, 1]} : vector<128x96xf32> to vector<128x8xf32>
    %8 = vector.extract_strided_slice %3 {offsets = [0, 32], sizes = [128, 8], strides = [1, 1]} : vector<128x96xf32> to vector<128x8xf32>
    %9 = vector.extract_strided_slice %3 {offsets = [0, 64], sizes = [128, 8], strides = [1, 1]} : vector<128x96xf32> to vector<128x8xf32>
    %cst_4 = arith.constant 0.353553385 : f32
    %10 = vector.broadcast %cst_4 : f32 to vector<128x8xf32>
    %11 = arith.mulf %7, %10 : vector<128x8xf32>
    %12 = arith.truncf %11 : vector<128x8xf32> to vector<128x8xbf16>
    %13 = arith.truncf %8 : vector<128x8xf32> to vector<128x8xbf16>
    %14 = arith.truncf %9 : vector<128x8xf32> to vector<128x8xbf16>
    %cst_5 = arith.constant dense<0.000000e+00> : vector<128x128xf32>
    %15 = tpu.matmul %12, %13, %cst_5 {dimension_numbers = #tpu.dot_dimension_numbers<[1], [1], [0], [0], [0, 0, 1, 0], [], []>} : vector<128x8xbf16>, vector<128x8xbf16>, vector<128x128xf32> -> vector<128x128xf32>
    %cst_6 = arith.constant -1.000000e+30 : f32
    %16 = vector.broadcast %cst_6 : f32 to vector<128x128xf32>
    %17 = arith.select %6, %15, %16 : vector<128x128xi1>, vector<128x128xf32>
    %cst_7 = arith.constant dense<0xFF800000> : vector<128xf32>
    %18 = vector.multi_reduction <maximumf>, %17, %cst_7 [1] : vector<128x128xf32> to vector<128xf32>
    %19 = vector.shape_cast %18 : vector<128xf32> to vector<128x1xf32>
    %20 = vector.broadcast %19 : vector<128x1xf32> to vector<128x128xf32>
    %21 = arith.subf %17, %20 : vector<128x128xf32>
    %22 = math.exp %21 : vector<128x128xf32>
    %cst_8 = arith.constant dense<0.000000e+00> : vector<128xf32>
    %23 = vector.multi_reduction <add>, %22, %cst_8 [1] : vector<128x128xf32> to vector<128xf32>
    %24 = vector.shape_cast %23 : vector<128xf32> to vector<128x1xf32>
    %25 = arith.truncf %22 : vector<128x128xf32> to vector<128x128xbf16>
    %cst_9 = arith.constant dense<0.000000e+00> : vector<128x8xf32>
    %26 = tpu.matmul %25, %14, %cst_9 {dimension_numbers = #tpu.dot_dimension_numbers<[1], [0], [0], [1], [0, 0, 1, 1], [], []>} : vector<128x128xbf16>, vector<128x8xbf16>, vector<128x8xf32> -> vector<128x8xf32>
    %27 = tpu.reciprocal %24 {approx = true} : vector<128x1xf32> -> vector<128x1xf32>
    %28 = vector.broadcast %27 : vector<128x1xf32> to vector<128x8xf32>
    %29 = arith.mulf %26, %28 : vector<128x8xf32>
    %30 = arith.truncf %29 : vector<128x8xf32> to vector<128x8xbf16>
    %c0_10 = arith.constant 0 : index
    %c0_11 = arith.constant 0 : index
    %31 = vector.load %arg6[%c0_10, %c0_11] : memref<128x32xbf16, #tpu.memory_space<vmem>>, vector<128x8xbf16>
    tpu.vector_store %arg6[%c0_10, %c0_11], %30 {strides = array<i32>} : memref<128x32xbf16, #tpu.memory_space<vmem>>, vector<128x8xbf16>,
    %32 = vector.extract_strided_slice %3 {offsets = [0, 8], sizes = [128, 8], strides = [1, 1]} : vector<128x96xf32> to vector<128x8xf32>
    %33 = vector.extract_strided_slice %3 {offsets = [0, 40], sizes = [128, 8], strides = [1, 1]} : vector<128x96xf32> to vector<128x8xf32>
    %34 = vector.extract_strided_slice %3 {offsets = [0, 72], sizes = [128, 8], strides = [1, 1]} : vector<128x96xf32> to vector<128x8xf32>
    %cst_12 = arith.constant 0.353553385 : f32
    %35 = vector.broadcast %cst_12 : f32 to vector<128x8xf32>
    %36 = arith.mulf %32, %35 : vector<128x8xf32>
    %37 = arith.truncf %36 : vector<128x8xf32> to vector<128x8xbf16>
    %38 = arith.truncf %33 : vector<128x8xf32> to vector<128x8xbf16>
    %39 = arith.truncf %34 : vector<128x8xf32> to vector<128x8xbf16>
    %cst_13 = arith.constant dense<0.000000e+00> : vector<128x128xf32>
    %40 = tpu.matmul %37, %38, %cst_13 {dimension_numbers = #tpu.dot_dimension_numbers<[1], [1], [0], [0], [0, 0, 1, 0], [], []>} : vector<128x8xbf16>, vector<128x8xbf16>, vector<128x128xf32> -> vector<128x128xf32>
    %cst_14 = arith.constant -1.000000e+30 : f32
    %41 = vector.broadcast %cst_14 : f32 to vector<128x128xf32>
    %42 = arith.select %6, %40, %41 : vector<128x128xi1>, vector<128x128xf32>
    %cst_15 = arith.constant dense<0xFF800000> : vector<128xf32>
    %43 = vector.multi_reduction <maximumf>, %42, %cst_15 [1] : vector<128x128xf32> to vector<128xf32>
    %44 = vector.shape_cast %43 : vector<128xf32> to vector<128x1xf32>
    %45 = vector.broadcast %44 : vector<128x1xf32> to vector<128x128xf32>
    %46 = arith.subf %42, %45 : vector<128x128xf32>
    %47 = math.exp %46 : vector<128x128xf32>
    %cst_16 = arith.constant dense<0.000000e+00> : vector<128xf32>
    %48 = vector.multi_reduction <add>, %47, %cst_16 [1] : vector<128x128xf32> to vector<128xf32>
    %49 = vector.shape_cast %48 : vector<128xf32> to vector<128x1xf32>
    %50 = arith.truncf %47 : vector<128x128xf32> to vector<128x128xbf16>
    %cst_17 = arith.constant dense<0.000000e+00> : vector<128x8xf32>
    %51 = tpu.matmul %50, %39, %cst_17 {dimension_numbers = #tpu.dot_dimension_numbers<[1], [0], [0], [1], [0, 0, 1, 1], [], []>} : vector<128x128xbf16>, vector<128x8xbf16>, vector<128x8xf32> -> vector<128x8xf32>
    %52 = tpu.reciprocal %49 {approx = true} : vector<128x1xf32> -> vector<128x1xf32>
    %53 = vector.broadcast %52 : vector<128x1xf32> to vector<128x8xf32>
    %54 = arith.mulf %51, %53 : vector<128x8xf32>
    %55 = arith.truncf %54 : vector<128x8xf32> to vector<128x8xbf16>
    %c0_18 = arith.constant 0 : index
    %c8 = arith.constant 8 : index
    %56 = vector.load %arg6[%c0_18, %c8] : memref<128x32xbf16, #tpu.memory_space<vmem>>, vector<128x8xbf16>
    tpu.vector_store %arg6[%c0_18, %c8], %55 {strides = array<i32>} : memref<128x32xbf16, #tpu.memory_space<vmem>>, vector<128x8xbf16>,
    %57 = vector.extract_strided_slice %3 {offsets = [0, 16], sizes = [128, 8], strides = [1, 1]} : vector<128x96xf32> to vector<128x8xf32>
    %58 = vector.extract_strided_slice %3 {offsets = [0, 48], sizes = [128, 8], strides = [1, 1]} : vector<128x96xf32> to vector<128x8xf32>
    %59 = vector.extract_strided_slice %3 {offsets = [0, 80], sizes = [128, 8], strides = [1, 1]} : vector<128x96xf32> to vector<128x8xf32>
    %cst_19 = arith.constant 0.353553385 : f32
    %60 = vector.broadcast %cst_19 : f32 to vector<128x8xf32>
    %61 = arith.mulf %57, %60 : vector<128x8xf32>
    %62 = arith.truncf %61 : vector<128x8xf32> to vector<128x8xbf16>
    %63 = arith.truncf %58 : vector<128x8xf32> to vector<128x8xbf16>
    %64 = arith.truncf %59 : vector<128x8xf32> to vector<128x8xbf16>
    %cst_20 = arith.constant dense<0.000000e+00> : vector<128x128xf32>
    %65 = tpu.matmul %62, %63, %cst_20 {dimension_numbers = #tpu.dot_dimension_numbers<[1], [1], [0], [0], [0, 0, 1, 0], [], []>} : vector<128x8xbf16>, vector<128x8xbf16>, vector<128x128xf32> -> vector<128x128xf32>
    %cst_21 = arith.constant -1.000000e+30 : f32
    %66 = vector.broadcast %cst_21 : f32 to vector<128x128xf32>
    %67 = arith.select %6, %65, %66 : vector<128x128xi1>, vector<128x128xf32>
    %cst_22 = arith.constant dense<0xFF800000> : vector<128xf32>
    %68 = vector.multi_reduction <maximumf>, %67, %cst_22 [1] : vector<128x128xf32> to vector<128xf32>
    %69 = vector.shape_cast %68 : vector<128xf32> to vector<128x1xf32>
    %70 = vector.broadcast %69 : vector<128x1xf32> to vector<128x128xf32>
    %71 = arith.subf %67, %70 : vector<128x128xf32>
    %72 = math.exp %71 : vector<128x128xf32>
    %cst_23 = arith.constant dense<0.000000e+00> : vector<128xf32>
    %73 = vector.multi_reduction <add>, %72, %cst_23 [1] : vector<128x128xf32> to vector<128xf32>
    %74 = vector.shape_cast %73 : vector<128xf32> to vector<128x1xf32>
    %75 = arith.truncf %72 : vector<128x128xf32> to vector<128x128xbf16>
    %cst_24 = arith.constant dense<0.000000e+00> : vector<128x8xf32>
    %76 = tpu.matmul %75, %64, %cst_24 {dimension_numbers = #tpu.dot_dimension_numbers<[1], [0], [0], [1], [0, 0, 1, 1], [], []>} : vector<128x128xbf16>, vector<128x8xbf16>, vector<128x8xf32> -> vector<128x8xf32>
    %77 = tpu.reciprocal %74 {approx = true} : vector<128x1xf32> -> vector<128x1xf32>
    %78 = vector.broadcast %77 : vector<128x1xf32> to vector<128x8xf32>
    %79 = arith.mulf %76, %78 : vector<128x8xf32>
    %80 = arith.truncf %79 : vector<128x8xf32> to vector<128x8xbf16>
    %c0_25 = arith.constant 0 : index
    %c16 = arith.constant 16 : index
    %81 = vector.load %arg6[%c0_25, %c16] : memref<128x32xbf16, #tpu.memory_space<vmem>>, vector<128x8xbf16>
    tpu.vector_store %arg6[%c0_25, %c16], %80 {strides = array<i32>} : memref<128x32xbf16, #tpu.memory_space<vmem>>, vector<128x8xbf16>,
    %82 = vector.extract_strided_slice %3 {offsets = [0, 24], sizes = [128, 8], strides = [1, 1]} : vector<128x96xf32> to vector<128x8xf32>
    %83 = vector.extract_strided_slice %3 {offsets = [0, 56], sizes = [128, 8], strides = [1, 1]} : vector<128x96xf32> to vector<128x8xf32>
    %84 = vector.extract_strided_slice %3 {offsets = [0, 88], sizes = [128, 8], strides = [1, 1]} : vector<128x96xf32> to vector<128x8xf32>
    %cst_26 = arith.constant 0.353553385 : f32
    %85 = vector.broadcast %cst_26 : f32 to vector<128x8xf32>
    %86 = arith.mulf %82, %85 : vector<128x8xf32>
    %87 = arith.truncf %86 : vector<128x8xf32> to vector<128x8xbf16>
    %88 = arith.truncf %83 : vector<128x8xf32> to vector<128x8xbf16>
    %89 = arith.truncf %84 : vector<128x8xf32> to vector<128x8xbf16>
    %cst_27 = arith.constant dense<0.000000e+00> : vector<128x128xf32>
    %90 = tpu.matmul %87, %88, %cst_27 {dimension_numbers = #tpu.dot_dimension_numbers<[1], [1], [0], [0], [0, 0, 1, 0], [], []>} : vector<128x8xbf16>, vector<128x8xbf16>, vector<128x128xf32> -> vector<128x128xf32>
    %cst_28 = arith.constant -1.000000e+30 : f32
    %91 = vector.broadcast %cst_28 : f32 to vector<128x128xf32>
    %92 = arith.select %6, %90, %91 : vector<128x128xi1>, vector<128x128xf32>
    %cst_29 = arith.constant dense<0xFF800000> : vector<128xf32>
    %93 = vector.multi_reduction <maximumf>, %92, %cst_29 [1] : vector<128x128xf32> to vector<128xf32>
    %94 = vector.shape_cast %93 : vector<128xf32> to vector<128x1xf32>
    %95 = vector.broadcast %94 : vector<128x1xf32> to vector<128x128xf32>
    %96 = arith.subf %92, %95 : vector<128x128xf32>
    %97 = math.exp %96 : vector<128x128xf32>
    %cst_30 = arith.constant dense<0.000000e+00> : vector<128xf32>
    %98 = vector.multi_reduction <add>, %97, %cst_30 [1] : vector<128x128xf32> to vector<128xf32>
    %99 = vector.shape_cast %98 : vector<128xf32> to vector<128x1xf32>
    %100 = arith.truncf %97 : vector<128x128xf32> to vector<128x128xbf16>
    %cst_31 = arith.constant dense<0.000000e+00> : vector<128x8xf32>
    %101 = tpu.matmul %100, %89, %cst_31 {dimension_numbers = #tpu.dot_dimension_numbers<[1], [0], [0], [1], [0, 0, 1, 1], [], []>} : vector<128x128xbf16>, vector<128x8xbf16>, vector<128x8xf32> -> vector<128x8xf32>
    %102 = tpu.reciprocal %99 {approx = true} : vector<128x1xf32> -> vector<128x1xf32>
    %103 = vector.broadcast %102 : vector<128x1xf32> to vector<128x8xf32>
    %104 = arith.mulf %101, %103 : vector<128x8xf32>
    %105 = arith.truncf %104 : vector<128x8xf32> to vector<128x8xbf16>
    %c0_32 = arith.constant 0 : index
    %c24 = arith.constant 24 : index
    %106 = vector.load %arg6[%c0_32, %c24] : memref<128x32xbf16, #tpu.memory_space<vmem>>, vector<128x8xbf16>
    tpu.vector_store %arg6[%c0_32, %c24], %105 {strides = array<i32>} : memref<128x32xbf16, #tpu.memory_space<vmem>>, vector<128x8xbf16>,
    %c0_33 = arith.constant 0 : index
    %c0_34 = arith.constant 0 : index
    %107 = vector.load %arg6[%c0_33, %c0_34] : memref<128x32xbf16, #tpu.memory_space<vmem>>, vector<128x32xbf16>
    %c0_35 = arith.constant 0 : index
    %c0_36 = arith.constant 0 : index
    %108 = vector.load %arg3[%c0_35, %c0_36] : memref<32x32xbf16, #tpu.memory_space<vmem>>, vector<32x32xbf16>
    %cst_37 = arith.constant dense<0.000000e+00> : vector<128x32xf32>
    %109 = tpu.matmul %107, %108, %cst_37 {dimension_numbers = #tpu.dot_dimension_numbers<[1], [0], [0], [1], [0, 0, 1, 1], [], []>} : vector<128x32xbf16>, vector<32x32xbf16>, vector<128x32xf32> -> vector<128x32xf32>
    %c0_38 = arith.constant 0 : index
    %c0_39 = arith.constant 0 : index
    %110 = vector.load %arg4[%c0_38, %c0_39] : memref<1x32xf32, #tpu.memory_space<vmem>>, vector<1x32xf32>
    %111 = vector.broadcast %110 : vector<1x32xf32> to vector<128x32xf32>
    %112 = arith.addf %109, %111 : vector<128x32xf32>
    %c0_40 = arith.constant 0 : index
    %c0_41 = arith.constant 0 : index
    %c0_42 = arith.constant 0 : index
    %113 = vector.load %arg5[%c0_40, %c0_41, %c0_42] : memref<1x128x32xf32, #tpu.memory_space<vmem>>, vector<1x128x32xf32>
    %114 = vector.shape_cast %113 : vector<1x128x32xf32> to vector<128x32xf32>
    %115 = vector.shape_cast %112 : vector<128x32xf32> to vector<1x128x32xf32>
    tpu.vector_store %arg5[%c0_40, %c0_41, %c0_42], %115 {strides = array<i32>} : memref<1x128x32xf32, #tpu.memory_space<vmem>>, vector<1x128x32xf32>,
    return
  }
  func.func @transform_0(%arg0: i32) -> (i32, i32, i32) {
    %c0_i32 = arith.constant 0 : i32
    %c0_i32_0 = arith.constant 0 : i32
    %c0_i32_1 = arith.constant 0 : i32
    return %arg0, %c0_i32, %c0_i32_0 : i32, i32, i32
  }
  func.func @transform_1(%arg0: i32) -> (i32, i32) {
    %c0_i32 = arith.constant 0 : i32
    %c0_i32_0 = arith.constant 0 : i32
    %c0_i32_1 = arith.constant 0 : i32
    return %c0_i32, %c0_i32_0 : i32, i32
  }
  func.func @transform_2(%arg0: i32) -> (i32, i32) {
    %c0_i32 = arith.constant 0 : i32
    %c0_i32_0 = arith.constant 0 : i32
    %c0_i32_1 = arith.constant 0 : i32
    return %c0_i32, %c0_i32_0 : i32, i32
  }
  func.func @transform_3(%arg0: i32) -> (i32, i32) {
    %c0_i32 = arith.constant 0 : i32
    %c0_i32_0 = arith.constant 0 : i32
    %c0_i32_1 = arith.constant 0 : i32
    return %c0_i32, %c0_i32_0 : i32, i32
  }
  func.func @transform_4(%arg0: i32) -> (i32, i32, i32) {
    %c0_i32 = arith.constant 0 : i32
    %c0_i32_0 = arith.constant 0 : i32
    %c0_i32_1 = arith.constant 0 : i32
    return %arg0, %c0_i32, %c0_i32_0 : i32, i32, i32
  }
}

</mosaic_0001>

<bundles_post_ra>
// kernel: tpu_custom_call.1
= control target key start
LH: loop header
LB: loop body
LE: loop exit
PB: predicated region body
PF: predicated region fallthrough
CT: control target
= control target key end

     0   :  { %s3582_s15 = smov 0   ;;  %s4846_s0 = inlined_call_operand.vmem [shape: bf16[2,128,32], index: 0, kind: input, shape index: {}]   ;;  %s4847_s1 = inlined_call_operand.vmem [shape: bf16[32,96], index: 1, kind: input, shape index: {}]   ;;  %s4848_s2 = inlined_call_operand.vmem [shape: bf16[32,32], index: 2, kind: input, shape index: {}]   ;;  %s4849_s3 = inlined_call_operand.vmem [shape: f32[1,32], index: 3, kind: input, shape index: {}]   ;;  %s4850_s4 = inlined_call_operand.vmem [shape: f32[2,128,32], index: 4, kind: output, shape index: {}]  }
   0x1 LB: > { %s2679_s16 = sadd.s32 4294967295, %s3541_s15   ;;  %p2683_p0 = scmp.ge.s32.totalorder %s3541_s15, 1  ;;  %s3541_s15 = sphi %s3582_s15, %s14_s15  }
   0x2   : > { %p162_p1 = scmp.lt.s32.totalorder %s3541_s15, 3 }
   0x4   : > { %p163_p2 = pnand %p2683_p0, %p162_p1 }
   0x6   : > { %166 = sbr.rel (%p163_p2) target bundleno = 2802 (0xaf2), region = 36 }
   0xd   : > { %v3267_v0 = vld [vmem:[%s4847_s1] sm:$0xff]   ;;  %p188_p3 = scmp.lt.s32.totalorder %s2679_s16, 1  ;;  %v3268_v1 = vld [vmem:[%s4847_s1 + $0x8] sm:$0xff]   ;;  %vm271_vm0 = vcmask 261120   ;;  %vm452_vm1 = vcmask 64512   ;;  %s3543_s25 = smov 96  }
   0xe   : > { %2901 = vmatprep.subr.bf16.mxu0 %v3267_v0  ;;  %s3544_s26 = smov 64   ;;  %s3545_s27 = smov 88   ;;  %vm1417_vm3 = vcmask 130112   ;;  %vm1932_vm4 = vcmask 195712   ;;  %vm2447_vm5 = vcmask 261312  }
   0xf   : > { %s4967_s16 = smov (!%p188_p3, %s2679_s16), 1  ;;  %2902 = vmatpush3.bf16.msra.mxu0 %v3267_v0  ;;  %s3546_s28 = smov 120  }
  0x10   : > { %2903 = vmatprep.subr.bf16.mxu0 %v3268_v1  ;;  %s2751_s21 = sshll.u32 %s4967_s16, 6  ;;  %s3547_s29 = smov 56  }
  0x11   : > { %s192_s24 = scalar_lea.vmem %s4846_s0, %s2751_s21  ;;  %s3548_s30 = smov 80  }
  0x12   : > { %v3269_v2 = vld [vmem:[%s192_s24] sm:$0xff]   ;;  %v3270_v3 = vld [vmem:[%s192_s24 + $0x8] sm:$0xff]   ;;  %v3271_v4 = vld [vmem:[%s192_s24 + $0x10] sm:$0xff]   ;;  %s3549_s5 = smov 112   ;;  %s3550_s6 = smov 48  }
  0x13   : > { %2904 = vmatpush3.bf16.msra.mxu0 %v3268_v1  ;;  %2905 = vmatprep.mubr.msk.bf16.mxu0 %vm271_vm0, %v3269_v2  ;;  %v3272_v5 = vld [vmem:[%s192_s24 + $0x18] sm:$0xff]   ;;  %v3273_v6 = vld [vmem:[%s192_s24 + $0x20] sm:$0xff]   ;;  %v3274_v7 = vld [vmem:[%s192_s24 + $0x28] sm:$0xff]   ;;  %s3551_s7 = smov 72   ;;  %s3552_s8 = smov 104  }
  0x14   : > { %v3275_v8 = vld [vmem:[%s192_s24 + $0x30] sm:$0xff]   ;;  %v3276_v9 = vld [vmem:[%s192_s24 + $0x38] sm:$0xff]   ;;  %s3553_s9 = smov 40   ;;  %s3554_s10 = smov 8  }
  0x15   : > { %s3555_s11 = smov 16   ;;  %s3556_s18 = smov 24  }
  0x16   : > { %2906 = vmatmul.mubr.msk.bf16.vlgmr.msra.gmra.mrb[0].mxu0 %vm271_vm0, %v3270_v3  ;;  %s2752_s19 = sshll.u32 %s4967_s16, 7 }
  0x17   : > { %2909 = vmatprep.mubr.msk.bf16.mxu0 %vm271_vm0, %v3271_v4  ;;  %s4809_s24 = scalar_lea.vmem %s4850_s4, %s2752_s19 }
  0x1e   : > { %2910 = vmatmul.mubr.msk.bf16.gmra.mrb[4].mxu0 %vm271_vm0, %v3272_v5 }
  0x1f   : > { %2913 = vmatprep.mubr.msk.bf16.mxu0 %vm271_vm0, %v3273_v6 }
  0x26   : > { %2914 = vmatmul.mubr.msk.bf16.gmra.mrb[8].mxu0 %vm271_vm0, %v3274_v7 }
  0x27   : > { %2917 = vmatprep.mubr.msk.bf16.mxu0 %vm271_vm0, %v3275_v8 }
  0x2e   : > { %2918 = vmatmul.mubr.msk.bf16.gmra.mrb[12].mxu0 %vm271_vm0, %v3276_v9 }
  0xe9   : > { %v2907_v10 = vpop.f32.mrb[0].mxu0 }
  0xea   : > { %v330_v11 = vpop.f32.mrb[1].mxu0  ;;  %v398_v13 = vmul.f32 0.35355338, %v2907_v10 }
  0xeb   : > { %v2908_v12 = vpop.f32.mrb[2].mxu0  ;;  %v396_v17 = vmul.f32 0.35355338, %v330_v11 }
  0xec   : > { %v399_v14 = vmul.f32 0.35355338, %v2908_v12  ;;  %v3610_v15 = vpack.c.bf16 %v2908_v12, %v2907_v10  ;;  %v333_v16 = vpop.f32.mrb[3].mxu0 }
  0xed   : > { %v397_v18 = vmul.f32 0.35355338, %v333_v16  ;;  %v3612_v19 = vpack.c.bf16 %v333_v16, %v330_v11 }
  0xee   : > { %v3614_v20 = vpack.c.bf16 %v399_v14, %v398_v13 }
  0xef   : > { %v3616_v21 = vpack.c.bf16 %v397_v18, %v396_v17  ;;  %436 = vrot.lane.b32.xlu0 %v3612_v19, %s3543_s25 }
  0xf1   : > { %2937 = vmatprep.mubr.msk.bf16.mxu1 %vm452_vm1, %v3616_v21  ;;  %v2911_v22 = vpop.f32.mrb[4].mxu0 }
  0xf2   : > { %v402_v23 = vmul.f32 0.35355338, %v2911_v22  ;;  %v346_v24 = vpop.f32.mrb[5].mxu0 }
  0xf3   : > { %438 = vrot.lane.b32.xlu0 %v3610_v15, %s3543_s25  ;;  %v400_v25 = vmul.f32 0.35355338, %v346_v24  ;;  %v2912_v26 = vpop.f32.mrb[6].mxu0 }
  0xf4   : > { %v403_v27 = vmul.f32 0.35355338, %v2912_v26  ;;  %v3624_v28 = vpack.c.bf16 %v2912_v26, %v2911_v22  ;;  %v349_v29 = vpop.f32.mrb[7].mxu0 }
  0xf5   : > { %v401_v30 = vmul.f32 0.35355338, %v349_v29  ;;  %v3626_v31 = vpack.c.bf16 %v349_v29, %v346_v24 }
  0xf6   : > { %v3628_v32 = vpack.c.bf16 %v403_v27, %v402_v23 }
  0xf7   : > { %v3630_v33 = vpack.c.bf16 %v401_v30, %v400_v25  ;;  %440 = vrot.lane.b32.xlu1 %v3626_v31, %s3543_s25  ;;  %v393_v25 = vlaneseq }
  0xf9   : > { %v2915_v34 = vpop.f32.mrb[8].mxu0  ;;  %v3714_v26 = vand.u32 127, %v393_v25 }
  0xfa   : > { %v406_v35 = vmul.f32 0.35355338, %v2915_v34  ;;  %v362_v36 = vpop.f32.mrb[9].mxu0 }
  0xfb   : > { %442 = vrot.lane.b32.xlu1 %v3624_v28, %s3543_s25  ;;  %v404_v37 = vmul.f32 0.35355338, %v362_v36  ;;  %v2916_v38 = vpop.f32.mrb[10].mxu0  ;;  %vm395_vm2 = vcmp.lt.s32.totalorder %v3714_v26, 8 }
  0xfc   : > { %v407_v39 = vmul.f32 0.35355338, %v2916_v38  ;;  %v3636_v40 = vpack.c.bf16 %v2916_v38, %v2915_v34  ;;  %v365_v41 = vpop.f32.mrb[11].mxu0 }
  0xfd   : > { %v405_v42 = vmul.f32 0.35355338, %v365_v41  ;;  %v3638_v43 = vpack.c.bf16 %v365_v41, %v362_v36 }
  0xfe   : > { %v3640_v44 = vpack.c.bf16 %v407_v39, %v406_v35 }
  0xff   : > { %v3642_v45 = vpack.c.bf16 %v405_v42, %v404_v37  ;;  %446 = vrot.lane.b32.xlu1 %v3636_v40, %s3543_s25  ;;  %444 = vrot.lane.b32.xlu0 %v3638_v43, %s3543_s25 }
 0x101   : > { %v2919_v46 = vpop.f32.mrb[12].mxu0 }
 0x102   : > { %v410_v47 = vmul.f32 0.35355338, %v2919_v46  ;;  %v378_v48 = vpop.f32.mrb[13].mxu0 }
 0x103   : > { %v408_v49 = vmul.f32 0.35355338, %v378_v48  ;;  %v2920_v50 = vpop.f32.mrb[14].mxu0 }
 0x104   : > { %v411_v51 = vmul.f32 0.35355338, %v2920_v50  ;;  %v3648_v52 = vpack.c.bf16 %v2920_v50, %v2919_v46  ;;  %v381_v53 = vpop.f32.mrb[15].mxu0 }
 0x105   : > { %v409_v54 = vmul.f32 0.35355338, %v381_v53  ;;  %v3650_v55 = vpack.c.bf16 %v381_v53, %v378_v48 }
 0x106   : > { %v3652_v56 = vpack.c.bf16 %v411_v51, %v410_v47  ;;  %450 = vrot.lane.b32.xlu1 %v3648_v52, %s3543_s25 }
 0x107   : > { %v3656_v57 = vpack.c.bf16 %v409_v54, %v408_v49  ;;  %448 = vrot.lane.b32.xlu0 %v3650_v55, %s3543_s25 }
 0x10a   : > { %736 = vrot.lane.b32.xlu1 %v3610_v15, %s3544_s26 }
 0x10b   : > { %734 = vrot.lane.b32.xlu0 %v3612_v19, %s3544_s26 }
 0x10e   : > { %738 = vrot.lane.b32.xlu1 %v3626_v31, %s3544_s26 }
 0x10f   : > { %740 = vrot.lane.b32.xlu0 %v3624_v28, %s3544_s26 }
 0x112   : > { %742 = vrot.lane.b32.xlu1 %v3638_v43, %s3544_s26 }
 0x113   : > { %927 = vrot.lane.b32.xlu0 %v3612_v19, %s3545_s27 }
 0x116   : > { %744 = vrot.lane.b32.xlu1 %v3636_v40, %s3544_s26 }
 0x117   : > { %929 = vrot.lane.b32.xlu0 %v3610_v15, %s3545_s27 }
 0x11a   : > { %748 = vrot.lane.b32.xlu1 %v3648_v52, %s3544_s26 }
 0x11b   : > { %933 = vrot.lane.b32.xlu0 %v3624_v28, %s3545_s27 }
 0x11e   : > { %931 = vrot.lane.b32.xlu1 %v3626_v31, %s3545_s27 }
 0x11f   : > { %746 = vrot.lane.b32.xlu0 %v3650_v55, %s3544_s26 }
 0x161   : > { %v437_v58 = vpop.permute.xlu0 %436 }
 0x162   : > { %3213 = vmatprep.subr.msk.bf16.mxu1 %vm452_vm1, %v437_v58  ;;  %v478_v59 = vsel %vm452_vm1, %v437_v58, 0 }
 0x163   : > { %2922 = vmatpush3.bf16.xpose.msra.mxu1 %v478_v59 }
 0x165   : > { %v439_v60 = vpop.permute.xlu0 %438 }
 0x166   : > { %3214 = vmatprep.subr.msk.bf16.mxu1 %vm452_vm1, %v439_v60  ;;  %v481_v62 = vsel %vm452_vm1, %v439_v60, 0 }
 0x169   : > { %v441_v61 = vpop.permute.xlu1 %440 }
 0x16a   : > { %v484_v0 = vsel %vm452_vm1, %v441_v61, 0 }
 0x16b   : > { %2924 = vmatpush3.bf16.xpose.msra.mxu1 %v481_v62 }
 0x16c   : > { %3215 = vmatprep.subr.msk.bf16.mxu1 %vm452_vm1, %v441_v61 }
 0x16d   : > { %v443_v63 = vpop.permute.xlu1 %442 }
 0x16e   : > { %v487_v5 = vsel %vm452_vm1, %v443_v63, 0 }
 0x171   : > { %v447_v1 = vpop.permute.xlu1 %446  ;;  %v445_v2 = vpop.permute.xlu0 %444 }
 0x172   : > { %v490_v9 = vsel %vm452_vm1, %v445_v2, 0  ;;  %v493_v14 = vsel %vm452_vm1, %v447_v1, 0 }
 0x173   : > { %2926 = vmatpush3.bf16.xpose.msra.mxu1 %v484_v0 }
 0x174   : > { %3216 = vmatprep.subr.msk.bf16.mxu1 %vm452_vm1, %v443_v63 }
 0x178   : > { %v451_v3 = vpop.permute.xlu1 %450 }
 0x179   : > { %v449_v4 = vpop.permute.xlu0 %448  ;;  %v499_v24 = vsel %vm452_vm1, %v451_v3, 0 }
 0x17a   : > { %v496_v18 = vsel %vm452_vm1, %v449_v4, 0 }
 0x17b   : > { %2928 = vmatpush3.bf16.xpose.msra.mxu1 %v487_v5 }
 0x17c   : > { %3217 = vmatprep.subr.msk.bf16.mxu1 %vm452_vm1, %v445_v2  ;;  %v737_v6 = vpop.permute.xlu1 %736 }
 0x17d   : > { %v735_v7 = vpop.permute.xlu0 %734 }
 0x17e   : > { %2953 = vmatprep.subr.bf16.mxu0 %v735_v7 }
 0x17f   : > { %2954 = vmatpush3.bf16.msra.mxu0 %v735_v7 }
 0x180   : > { %2955 = vmatprep.subr.bf16.mxu0 %v737_v6  ;;  %v739_v10 = vpop.permute.xlu1 %738 }
 0x181   : > { %v741_v8 = vpop.permute.xlu0 %740 }
 0x183   : > { %2930 = vmatpush3.bf16.xpose.msra.mxu1 %v490_v9  ;;  %2956 = vmatpush3.bf16.msra.mxu0 %v737_v6 }
 0x184   : > { %3218 = vmatprep.subr.msk.bf16.mxu1 %vm452_vm1, %v447_v1  ;;  %2957 = vmatprep.subr.bf16.mxu0 %v739_v10  ;;  %v743_v12 = vpop.permute.xlu1 %742 }
 0x185   : > { %v3687_v11 = vpop.permute.xlu0 %927 }
 0x187   : > { %2958 = vmatpush3.bf16.msra.mxu0 %v739_v10 }
 0x188   : > { %2959 = vmatprep.subr.bf16.mxu0 %v741_v8  ;;  %v745_v17 = vpop.permute.xlu1 %744 }
 0x189   : > { %v3689_v13 = vpop.permute.xlu0 %929 }
 0x18b   : > { %2932 = vmatpush3.bf16.xpose.msra.mxu1 %v493_v14  ;;  %2960 = vmatpush3.bf16.msra.mxu0 %v741_v8 }
 0x18c   : > { %2961 = vmatprep.subr.bf16.mxu0 %v743_v12  ;;  %3219 = vmatprep.subr.msk.bf16.mxu1 %vm452_vm1, %v449_v4  ;;  %v749_v23 = vpop.permute.xlu1 %748 }
 0x18d   : > { %v3693_v16 = vpop.permute.xlu0 %933 }
 0x18f   : > { %2962 = vmatpush3.bf16.msra.mxu0 %v743_v12 }
 0x190   : > { %2963 = vmatprep.subr.bf16.mxu0 %v745_v17  ;;  %v3825_v7 = vpop.permute.xlu1 %931 }
 0x191   : > { %v747_v22 = vpop.permute.xlu0 %746 }
 0x193   : > { %2934 = vmatpush3.bf16.xpose.msra.mxu1 %v496_v18  ;;  %2964 = vmatpush3.bf16.msra.mxu0 %v745_v17 }
 0x194   : > { %3220 = vmatprep.subr.msk.bf16.mxu1 %vm452_vm1, %v451_v3  ;;  %2965 = vmatprep.subr.bf16.mxu0 %v747_v22 }
 0x197   : > { %2966 = vmatpush3.bf16.msra.mxu0 %v747_v22 }
 0x198   : > { %2967 = vmatprep.subr.bf16.mxu0 %v749_v23 }
 0x19b   : > { %2936 = vmatpush3.bf16.xpose.msra.mxu1 %v499_v24  ;;  %2968 = vmatpush3.bf16.msra.mxu0 %v749_v23 }
 0x19c   : > { %3221 = vmatprep.subr.msk.bf16.mxu0 %vm452_vm1, %v3687_v11 }
 0x1a2   : > { %2938 = vmatmul.mubr.msk.bf16.vlgmr.msra.gmra.mrb[0].mxu1 %vm452_vm1, %v3614_v20 }
 0x1a3   : > { %2941 = vmatprep.mubr.msk.bf16.mxu1 %vm452_vm1, %v3630_v33 }
 0x1aa   : > { %2942 = vmatmul.mubr.msk.bf16.gmra.mrb[4].mxu1 %vm452_vm1, %v3628_v32 }
 0x1ab   : > { %2945 = vmatprep.mubr.msk.bf16.mxu1 %vm452_vm1, %v3642_v45 }
 0x1b2   : > { %2946 = vmatmul.mubr.msk.bf16.gmra.mrb[8].mxu1 %vm452_vm1, %v3640_v44 }
 0x1b3   : > { %2949 = vmatprep.mubr.msk.bf16.mxu1 %vm452_vm1, %v3656_v57 }
 0x1ba   : > { %2950 = vmatmul.mubr.msk.bf16.gmra.mrb[12].mxu1 %vm452_vm1, %v3652_v56 }
 0x275   : > { %v2939_v27 = vpop.f32.mrb[0].mxu1 }
 0x276   : > { %v535_v29 = vpop.f32.mrb[1].mxu1  ;;  %v3719_v30 = vsel %vm395_vm2, %v2939_v27, -1e+30 }
 0x277   : > { %618 = vmax.xlane.f32.xlu0 %v3719_v30  ;;  %v2940_v34 = vpop.f32.mrb[2].mxu1  ;;  %v3729_v37 = vsel %vm395_vm2, %v535_v29, -1e+30 }
 0x278   : > { %v538_v35 = vpop.f32.mrb[3].mxu1  ;;  %v3734_v41 = vsel %vm395_vm2, %v2940_v34, -1e+30 }
 0x279   : > { %v3724_v36 = vsel %vm395_vm2, %v538_v35, -1e+30 }
 0x27a   : > { %616 = vmax.xlane.f32.xlu1 %v3724_v36 }
 0x27b   : > { %614 = vmax.xlane.f32.xlu0 %v3729_v37 }
 0x27d   : > { %v2943_v38 = vpop.f32.mrb[4].mxu1 }
 0x27e   : > { %v551_v39 = vpop.f32.mrb[5].mxu1  ;;  %v3738_v42 = vsel %vm395_vm2, %v2943_v38, -1e+30 }
 0x27f   : > { %620 = vmax.xlane.f32.xlu0 %v3734_v41  ;;  %626 = vmax.xlane.f32.xlu1 %v3738_v42  ;;  %v2944_v46 = vpop.f32.mrb[6].mxu1  ;;  %v3748_v49 = vsel %vm395_vm2, %v551_v39, -1e+30 }
 0x280   : > { %v554_v47 = vpop.f32.mrb[7].mxu1  ;;  %v3754_v53 = vsel %vm395_vm2, %v2944_v46, -1e+30 }
 0x281   : > { %v3744_v48 = vsel %vm395_vm2, %v554_v47, -1e+30 }
 0x283   : > { %622 = vmax.xlane.f32.xlu1 %v3748_v49  ;;  %624 = vmax.xlane.f32.xlu0 %v3744_v48 }
 0x285   : > { %v2947_v50 = vpop.f32.mrb[8].mxu1 }
 0x286   : > { %v567_v51 = vpop.f32.mrb[9].mxu1  ;;  %v3758_v54 = vsel %vm395_vm2, %v2947_v50, -1e+30 }
 0x287   : > { %628 = vmax.xlane.f32.xlu1 %v3754_v53  ;;  %634 = vmax.xlane.f32.xlu0 %v3758_v54  ;;  %v2948_v58 = vpop.f32.mrb[10].mxu1  ;;  %v3764_v60 = vsel %vm395_vm2, %v567_v51, -1e+30 }
 0x288   : > { %v570_v59 = vpop.f32.mrb[11].mxu1  ;;  %v3769_v63 = vsel %vm395_vm2, %v2948_v58, -1e+30 }
 0x289   : > { %v3779_v3 = vsel %vm395_vm2, %v570_v59, -1e+30 }
 0x28b   : > { %630 = vmax.xlane.f32.xlu1 %v3764_v60 }
 0x28d   : > { %v2951_v61 = vpop.f32.mrb[12].mxu1 }
 0x28e   : > { %v583_v62 = vpop.f32.mrb[13].mxu1  ;;  %v3784_v4 = vsel %vm395_vm2, %v2951_v61, -1e+30 }
 0x28f   : > { %636 = vmax.xlane.f32.xlu1 %v3769_v63  ;;  %v2952_v0 = vpop.f32.mrb[14].mxu1  ;;  %v3774_v1 = vsel %vm395_vm2, %v583_v62, -1e+30 }
 0x290   : > { %638 = vmax.xlane.f32.xlu0 %v3774_v1  ;;  %v586_v2 = vpop.f32.mrb[15].mxu1  ;;  %v3789_v5 = vsel %vm395_vm2, %v2952_v0, -1e+30 }
 0x291   : > { %v3804_v6 = vsel %vm395_vm2, %v586_v2, -1e+30 }
 0x293   : > { %632 = vmax.xlane.f32.xlu1 %v3779_v3 }
 0x297   : > { %642 = vmax.xlane.f32.xlu1 %v3784_v4 }
 0x29b   : > { %644 = vmax.xlane.f32.xlu1 %v3789_v5 }
 0x2a6   : > { %937 = vrot.lane.b32.xlu0 %v3636_v40, %s3545_s27 }
 0x2ac   : > { %935 = vrot.lane.b32.xlu1 %v3638_v43, %s3545_s27 }
 0x2b0   : > { %913 = vrot.lane.b32.xlu1 %v3614_v20, %s3546_s28 }
 0x2b4   : > { %917 = vrot.lane.b32.xlu1 %v3628_v32, %s3546_s28 }
 0x2b8   : > { %921 = vrot.lane.b32.xlu1 %v3640_v44, %s3546_s28 }
 0x2bc   : > { %925 = vrot.lane.b32.xlu1 %v3652_v56, %s3546_s28 }
 0x2c0   : > { %1226 = vrot.lane.b32.xlu1 %v3610_v15, %s3547_s29 }
 0x2c4   : > { %1228 = vrot.lane.b32.xlu1 %v3626_v31, %s3547_s29 }
 0x2c5   : > { %640 = vmax.xlane.f32.xlu0 %v3804_v6 }
 0x2c8   : > { %1232 = vrot.lane.b32.xlu1 %v3638_v43, %s3547_s29 }
 0x2cc   : > { %1234 = vrot.lane.b32.xlu1 %v3636_v40, %s3547_s29 }
 0x2d0   : > { %1238 = vrot.lane.b32.xlu1 %v3648_v52, %s3547_s29 }
 0x2d4   : > { %1446 = vrot.lane.b32.xlu1 %v3626_v31, %s3548_s30 }
 0x2db   : > { %939 = vrot.lane.b32.xlu0 %v3650_v55, %s3545_s27 }
 0x2df   : > { %941 = vrot.lane.b32.xlu0 %v3648_v52, %s3545_s27 }
 0x2e3   : > { %911 = vrot.lane.b32.xlu0 %v3616_v21, %s3546_s28 }
 0x2e7   : > { %915 = vrot.lane.b32.xlu0 %v3630_v33, %s3546_s28 }
 0x2eb   : > { %919 = vrot.lane.b32.xlu0 %v3642_v45, %s3546_s28 }
 0x2ef   : > { %923 = vrot.lane.b32.xlu0 %v3656_v57, %s3546_s28 }
 0x2f3   : > { %1224 = vrot.lane.b32.xlu0 %v3612_v19, %s3547_s29 }
 0x2f7   : > { %1230 = vrot.lane.b32.xlu0 %v3624_v28, %s3547_s29 }
 0x2fb   : > { %1236 = vrot.lane.b32.xlu0 %v3650_v55, %s3547_s29 }
 0x2ff   : > { %1442 = vrot.lane.b32.xlu0 %v3612_v19, %s3548_s30 }
 0x303   : > { %1444 = vrot.lane.b32.xlu0 %v3610_v15, %s3548_s30 }
 0x304   : > { %v619_v8 = vpop.xlane.xlu0 %618 }
 0x305   : > { %v648_v14 = vsub.f32 %v3719_v30, %v619_v8 }
 0x307   : > { %v617_v9 = vpop.xlane.xlu1 %616  ;;  %1448 = vrot.lane.b32.xlu0 %v3624_v28, %s3548_s30  ;;  %v666_v25 = vmul.f32 1.442695, %v648_v14 }
 0x308   : > { %v647_v10 = vsub.f32 %v3724_v36, %v617_v9  ;;  %v615_v12 = vpop.xlane.xlu0 %614 }
 0x309   : > { %v646_v17 = vsub.f32 %v3729_v37, %v615_v12  ;;  %v968_v12 = vsel %vm452_vm1, %v3687_v11, 0 }
 0x30a   : > { %v664_v18 = vmul.f32 1.442695, %v647_v10 }
 0x30b   : > { %v662_v22 = vmul.f32 1.442695, %v646_v17 }
 0x30c   : > { %3279 = vpow2.f32 %v664_v18  ;;  %v627_v23 = vpop.xlane.xlu1 %626  ;;  %v621_v24 = vpop.xlane.xlu0 %620 }
 0x30d   : > { %3281 = vpow2.f32 %v662_v22  ;;  %v649_v27 = vsub.f32 %v3734_v41, %v621_v24  ;;  %v652_v34 = vsub.f32 %v3738_v42, %v627_v23 }
 0x30e   : > { %3283 = vpow2.f32 %v666_v25 }
 0x30f   : > { %v668_v29 = vmul.f32 1.442695, %v649_v27  ;;  %v674_v46 = vmul.f32 1.442695, %v652_v34 }
 0x310   : > { %v623_v35 = vpop.xlane.xlu1 %622  ;;  %v625_v38 = vpop.xlane.xlu0 %624 }
 0x311   : > { %v650_v36 = vsub.f32 %v3748_v49, %v623_v35  ;;  %v651_v30 = vsub.f32 %v3744_v48, %v625_v38  ;;  %3285 = vpow2.f32 %v668_v29  ;;  %v974_v35 = vsel %vm452_vm1, %v3825_v7, 0 }
 0x313   : > { %v670_v37 = vmul.f32 1.442695, %v650_v36  ;;  %v672_v39 = vmul.f32 1.442695, %v651_v30 }
 0x314   : > { %v629_v47 = vpop.xlane.xlu1 %628  ;;  %v635_v59 = vpop.xlane.xlu0 %634 }
 0x315   : > { %3287 = vpow2.f32 %v670_v37  ;;  %v653_v50 = vsub.f32 %v3754_v53, %v629_v47  ;;  %v656_v8 = vsub.f32 %v3758_v54, %v635_v59  ;;  %v977_v37 = vsel %vm452_vm1, %v3693_v16, 0 }
 0x316   : > { %v3839_v51 = vpop.eup %3279  ;;  %3289 = vpow2.f32 %v672_v39 }
 0x317   : > { %v3841_v41 = vpop.eup %3281  ;;  %v676_v42 = vmul.f32 1.442695, %v653_v50  ;;  %3291 = vpow2.f32 %v674_v46  ;;  %v682_v22 = vmul.f32 1.442695, %v656_v8 }
 0x318   : > { %v631_v58 = vpop.xlane.xlu1 %630  ;;  %v726_v49 = vpack.c.bf16 %v3839_v51, %v3841_v41  ;;  %v3845_v48 = vpop.eup %3283 }
 0x319   : > { %3293 = vpow2.f32 %v676_v42  ;;  %v654_v61 = vsub.f32 %v3764_v60, %v631_v58 }
 0x31a   : > { %2969 = vmatprep.mubr.bf16.mxu0 %v726_v49 }
 0x31b   : > { %v3848_v62 = vpop.eup %3285  ;;  %v678_v10 = vmul.f32 1.442695, %v654_v61 }
 0x31c   : > { %v637_v53 = vpop.xlane.xlu1 %636  ;;  %v727_v2 = vpack.c.bf16 %v3848_v62, %v3845_v48 }
 0x31d   : > { %v657_v0 = vsub.f32 %v3769_v63, %v637_v53  ;;  %3295 = vpow2.f32 %v678_v10 }
 0x31e   : > { %2970 = vmatmul.mubr.bf16.vlgmr.msra.gmra.mrb[16].mxu0 %v727_v2 }
 0x31f   : > { %v3854_v9 = vpop.eup %3287  ;;  %v684_v60 = vmul.f32 1.442695, %v657_v0  ;;  %2986 = vmatpush3.bf16.xpose.msra.mxu0 %v968_v12 }
 0x320   : > { %v3858_v14 = vpop.eup %3289  ;;  %v633_v17 = vpop.xlane.xlu1 %632  ;;  %3222 = vmatprep.subr.msk.bf16.mxu0 %vm452_vm1, %v3689_v13 }
 0x321   : > { %v655_v63 = vsub.f32 %v3779_v3, %v633_v17  ;;  %v728_v54 = vpack.c.bf16 %v3858_v14, %v3854_v9  ;;  %v3865_v18 = vpop.eup %3291  ;;  %3297 = vpow2.f32 %v684_v60  ;;  %v971_v3 = vsel %vm452_vm1, %v3689_v13, 0 }
 0x323   : > { %v3867_v23 = vpop.eup %3293  ;;  %v680_v11 = vmul.f32 1.442695, %v655_v63  ;;  %2973 = vmatprep.mubr.bf16.mxu0 %v728_v54 }
 0x324   : > { %v729_v24 = vpack.c.bf16 %v3867_v23, %v3865_v18  ;;  %v643_v25 = vpop.xlane.xlu1 %642 }
 0x325   : > { %3299 = vpow2.f32 %v680_v11 }
 0x326   : > { %3301 = vpow2.f32 %v682_v22  ;;  %2974 = vmatmul.mubr.bf16.gmra.mrb[20].mxu0 %v729_v24 }
 0x327   : > { %2988 = vmatpush3.bf16.xpose.msra.mxu0 %v971_v3  ;;  %v3875_v27 = vpop.eup %3295 }
 0x328   : > { %3223 = vmatprep.subr.msk.bf16.mxu0 %vm452_vm1, %v3825_v7  ;;  %v645_v30 = vpop.xlane.xlu1 %644  ;;  %v639_v7 = vpop.xlane.xlu0 %638 }
 0x329   : > { %v658_v42 = vsub.f32 %v3774_v1, %v639_v7  ;;  %v661_v58 = vsub.f32 %v3789_v5, %v645_v30 }
 0x32b   : > { %v3877_v29 = vpop.eup %3297  ;;  %v686_v49 = vmul.f32 1.442695, %v658_v42  ;;  %v692_v59 = vmul.f32 1.442695, %v661_v58 }
 0x32c   : > { %4858 = vst [vmem:[#allocation3_spill] sm:$0xff] %v3877_v29  ;;  %v936_v39 = vpop.permute.xlu1 %935  ;;  %v938_v47 = vpop.permute.xlu0 %937 }
 0x32d   : > { %v980_v46 = vsel %vm452_vm1, %v936_v39, 0  ;;  %v983_v50 = vsel %vm452_vm1, %v938_v47, 0  ;;  %3303 = vpow2.f32 %v686_v49 }
 0x32e   : > { %3305 = vpow2.f32 %v692_v59 }
 0x32f   : > { %v3879_v34 = vpop.eup %3299  ;;  %2990 = vmatpush3.bf16.xpose.msra.mxu0 %v974_v35 }
 0x330   : > { %4859 = vst [vmem:[#allocation4_spill] sm:$0xff] %v3879_v34  ;;  %v3883_v38 = vpop.eup %3301  ;;  %v730_v13 = vpack.c.bf16 %v3879_v34, %v3875_v27  ;;  %3224 = vmatprep.subr.msk.bf16.mxu0 %vm452_vm1, %v3693_v16  ;;  %v660_v16 = vsub.f32 %v3784_v4, %v643_v25  ;;  %v914_v8 = vpop.permute.xlu1 %913 }
 0x331   : > { %4860 = vst [vmem:[#allocation5_spill] sm:$0xff] %v3883_v38  ;;  %v731_v36 = vpack.c.bf16 %v3877_v29, %v3883_v38 }
 0x332   : > { %2977 = vmatprep.mubr.bf16.mxu0 %v730_v13  ;;  %v690_v0 = vmul.f32 1.442695, %v660_v16 }
 0x333   : > { %2978 = vmatmul.mubr.bf16.gmra.mrb[24].mxu0 %v731_v36 }
 0x334   : > { %v918_v4 = vpop.permute.xlu1 %917 }
 0x337   : > { %2992 = vmatpush3.bf16.xpose.msra.mxu0 %v977_v37  ;;  %v3904_v60 = vpop.eup %3303 }
 0x338   : > { %3225 = vmatprep.subr.msk.bf16.mxu0 %vm452_vm1, %v936_v39  ;;  %4861 = vst [vmem:[#allocation6_spill] sm:$0xff] %v3904_v60  ;;  %v3907_v17 = vpop.eup %3305  ;;  %v922_v22 = vpop.permute.xlu1 %921 }
 0x339   : > { %4862 = vst [vmem:[#allocation7_spill] sm:$0xff] %v3907_v17 }
 0x33c   : > { %v926_v35 = vpop.permute.xlu1 %925 }
 0x33f   : > { %2994 = vmatpush3.bf16.xpose.msra.mxu0 %v980_v46 }
 0x340   : > { %3226 = vmatprep.subr.msk.bf16.mxu0 %vm452_vm1, %v938_v47  ;;  %v1227_v36 = vpop.permute.xlu1 %1226 }
 0x344   : > { %v1229_v37 = vpop.permute.xlu1 %1228 }
 0x347   : > { %2996 = vmatpush3.bf16.xpose.msra.mxu0 %v983_v50 }
 0x348   : > { %v1233_v7 = vpop.permute.xlu1 %1232 }
 0x34c   : > { %v1235_v46 = vpop.permute.xlu1 %1234 }
 0x350   : > { %v1239_v50 = vpop.permute.xlu1 %1238 }
 0x352   : > { %v641_v61 = vpop.xlane.xlu0 %640 }
 0x353   : > { %v659_v53 = vsub.f32 %v3804_v6, %v641_v61 }
 0x355   : > { %v688_v2 = vmul.f32 1.442695, %v659_v53 }
 0x356   : > { %v940_v10 = vpop.permute.xlu0 %939 }
 0x357   : > { %3307 = vpow2.f32 %v688_v2  ;;  %3227 = vmatprep.subr.msk.bf16.mxu0 %vm452_vm1, %v940_v10  ;;  %v986_v1 = vsel %vm452_vm1, %v940_v10, 0 }
 0x358   : > { %3309 = vpow2.f32 %v690_v0  ;;  %2998 = vmatpush3.bf16.xpose.msra.mxu0 %v986_v1 }
 0x35a   : > { %v942_v5 = vpop.permute.xlu0 %941 }
 0x35b   : > { %3228 = vmatprep.subr.msk.bf16.mxu0 %vm452_vm1, %v942_v5  ;;  %v989_v6 = vsel %vm452_vm1, %v942_v5, 0 }
 0x35e   : > { %v912_v12 = vpop.permute.xlu0 %911 }
 0x360   : > { %3000 = vmatpush3.bf16.xpose.msra.mxu0 %v989_v6 }
 0x361   : > { %v3909_v63 = vpop.eup %3307 }
 0x362   : > { %4863 = vst [vmem:[#allocation8_spill] sm:$0xff] %v3909_v63  ;;  %v3911_v54 = vpop.eup %3309  ;;  %v916_v11 = vpop.permute.xlu0 %915  ;;  %v732_v24 = vpack.c.bf16 %v3909_v63, %v3904_v60 }
 0x363   : > { %4864 = vst [vmem:[#allocation9_spill] sm:$0xff] %v3911_v54  ;;  %v733_v3 = vpack.c.bf16 %v3907_v17, %v3911_v54 }
 0x364   : > { %2981 = vmatprep.mubr.bf16.mxu0 %v732_v24 }
 0x365   : > { %2982 = vmatmul.mubr.bf16.gmra.mrb[28].mxu0 %v733_v3 }
 0x366   : > { %3001 = vmatprep.mubr.msk.bf16.mxu0 %vm452_vm1, %v912_v12  ;;  %v920_v25 = vpop.permute.xlu0 %919 }
 0x36a   : > { %v924_v13 = vpop.permute.xlu0 %923 }
 0x36d   : > { %3002 = vmatmul.mubr.msk.bf16.vlgmr.msra.gmra.mrb[32].mxu0 %vm452_vm1, %v914_v8 }
 0x36e   : > { %3005 = vmatprep.mubr.msk.bf16.mxu0 %vm452_vm1, %v916_v11  ;;  %v1225_v30 = vpop.permute.xlu0 %1224 }
 0x36f   : > { %3017 = vmatprep.subr.bf16.mxu1 %v1225_v30 }
 0x370   : > { %3018 = vmatpush3.bf16.msra.mxu1 %v1225_v30 }
 0x371   : > { %3019 = vmatprep.subr.bf16.mxu1 %v1227_v36 }
 0x372   : > { %v1231_v39 = vpop.permute.xlu0 %1230 }
 0x374   : > { %3020 = vmatpush3.bf16.msra.mxu1 %v1227_v36 }
 0x375   : > { %3006 = vmatmul.mubr.msk.bf16.gmra.mrb[36].mxu0 %vm452_vm1, %v918_v4  ;;  %3021 = vmatprep.subr.bf16.mxu1 %v1229_v37 }
 0x376   : > { %3009 = vmatprep.mubr.msk.bf16.mxu0 %vm452_vm1, %v920_v25  ;;  %v1237_v47 = vpop.permute.xlu0 %1236 }
 0x378   : > { %3022 = vmatpush3.bf16.msra.mxu1 %v1229_v37 }
 0x379   : > { %3023 = vmatprep.subr.bf16.mxu1 %v1231_v39 }
 0x37a   : > { %v3925_v42 = vpop.permute.xlu0 %1442 }
 0x37c   : > { %3024 = vmatpush3.bf16.msra.mxu1 %v1231_v39 }
 0x37d   : > { %3010 = vmatmul.mubr.msk.bf16.gmra.mrb[40].mxu0 %vm452_vm1, %v922_v22  ;;  %3025 = vmatprep.subr.bf16.mxu1 %v1233_v7 }
 0x37e   : > { %3013 = vmatprep.mubr.msk.bf16.mxu0 %vm452_vm1, %v924_v13 }
 0x380   : > { %3026 = vmatpush3.bf16.msra.mxu1 %v1233_v7 }
 0x381   : > { %3027 = vmatprep.subr.bf16.mxu1 %v1235_v46 }
 0x384   : > { %3028 = vmatpush3.bf16.msra.mxu1 %v1235_v46 }
 0x385   : > { %3014 = vmatmul.mubr.msk.bf16.gmra.mrb[44].mxu0 %vm452_vm1, %v926_v35  ;;  %3029 = vmatprep.subr.bf16.mxu1 %v1237_v47 }
 0x388   : > { %3030 = vmatpush3.bf16.msra.mxu1 %v1237_v47 }
 0x389   : > { %3031 = vmatprep.subr.bf16.mxu1 %v1239_v50 }
 0x38c   : > { %3032 = vmatpush3.bf16.msra.mxu1 %v1239_v50 }
 0x38d   : > { %3229 = vmatprep.subr.msk.bf16.mxu1 %vm452_vm1, %v3925_v42 }
 0x3f1   : > { %v3929_v58 = vpop.f32.mrb[16].mxu0 }
 0x3f2   : > { %4865 = vst [vmem:[#allocation10_spill] sm:$0xff] %v3929_v58  ;;  %v3931_v16 = vpop.f32.mrb[17].mxu0 }
 0x3f3   : > { %4866 = vst [vmem:[#allocation11_spill] sm:$0xff] %v3931_v16  ;;  %v3933_v49 = vpop.f32.mrb[18].mxu0 }
 0x3f4   : > { %4867 = vst [vmem:[#allocation12_spill] sm:$0xff] %v3933_v49  ;;  %v3935_v59 = vpop.f32.mrb[19].mxu0 }
 0x3f5   : > { %4868 = vst [vmem:[#allocation13_spill] sm:$0xff] %v3935_v59 }
 0x3f9   : > { %v3937_v61 = vpop.f32.mrb[20].mxu0 }
 0x3fa   : > { %4869 = vst [vmem:[#allocation14_spill] sm:$0xff] %v3937_v61  ;;  %v3939_v53 = vpop.f32.mrb[21].mxu0 }
 0x3fb   : > { %4870 = vst [vmem:[#allocation15_spill] sm:$0xff] %v3939_v53  ;;  %v3941_v0 = vpop.f32.mrb[22].mxu0 }
 0x3fc   : > { %4871 = vst [vmem:[#allocation16_spill] sm:$0xff] %v3941_v0  ;;  %v3943_v2 = vpop.f32.mrb[23].mxu0 }
 0x3fd   : > { %4872 = vst [vmem:[#allocation17_spill] sm:$0xff] %v3943_v2 }
 0x406   : > { %v3945_v8 = vpop.f32.mrb[24].mxu0 }
 0x407   : > { %4873 = vst [vmem:[#allocation18_spill] sm:$0xff] %v3945_v8  ;;  %v3947_v10 = vpop.f32.mrb[25].mxu0 }
 0x408   : > { %4874 = vst [vmem:[#allocation19_spill] sm:$0xff] %v3947_v10  ;;  %v3949_v1 = vpop.f32.mrb[26].mxu0 }
 0x409   : > { %4875 = vst [vmem:[#allocation20_spill] sm:$0xff] %v3949_v1  ;;  %v3951_v5 = vpop.f32.mrb[27].mxu0 }
 0x40a   : > { %4876 = vst [vmem:[#allocation21_spill] sm:$0xff] %v3951_v5 }
 0x438   : > { %v3953_v4 = vpop.f32.mrb[28].mxu0 }
 0x439   : > { %4877 = vst [vmem:[#allocation22_spill] sm:$0xff] %v3953_v4  ;;  %v3955_v12 = vpop.f32.mrb[29].mxu0 }
 0x43a   : > { %4878 = vst [vmem:[#allocation23_spill] sm:$0xff] %v3955_v12  ;;  %v3957_v6 = vpop.f32.mrb[30].mxu0 }
 0x43b   : > { %4879 = vst [vmem:[#allocation24_spill] sm:$0xff] %v3957_v6  ;;  %v3959_v22 = vpop.f32.mrb[31].mxu0 }
 0x43c   : > { %4880 = vst [vmem:[#allocation25_spill] sm:$0xff] %v3959_v22 }
 0x440   : > { %v3003_v11 = vpop.f32.mrb[32].mxu0 }
 0x441   : > { %v1025_v24 = vpop.f32.mrb[33].mxu0  ;;  %v3963_v3 = vsel %vm395_vm2, %v3003_v11, -1e+30 }
 0x442   : > { %1108 = vmax.xlane.f32.xlu0 %v3963_v3  ;;  %v3004_v25 = vpop.f32.mrb[34].mxu0  ;;  %v3973_v36 = vsel %vm395_vm2, %v1025_v24, -1e+30 }
 0x443   : > { %v1028_v35 = vpop.f32.mrb[35].mxu0  ;;  %v3978_v39 = vsel %vm395_vm2, %v3004_v25, -1e+30 }
 0x444   : > { %v3968_v13 = vsel %vm395_vm2, %v1028_v35, -1e+30 }
 0x445   : > { %1106 = vmax.xlane.f32.xlu1 %v3968_v13 }
 0x446   : > { %1104 = vmax.xlane.f32.xlu0 %v3973_v36 }
 0x448   : > { %v3007_v30 = vpop.f32.mrb[36].mxu0 }
 0x449   : > { %v1041_v37 = vpop.f32.mrb[37].mxu0  ;;  %v3982_v7 = vsel %vm395_vm2, %v3007_v30, -1e+30 }
 0x44a   : > { %1110 = vmax.xlane.f32.xlu0 %v3978_v39  ;;  %1116 = vmax.xlane.f32.xlu1 %v3982_v7  ;;  %v3008_v46 = vpop.f32.mrb[38].mxu0  ;;  %v3992_v11 = vsel %vm395_vm2, %v1041_v37, -1e+30 }
 0x44b   : > { %v1044_v47 = vpop.f32.mrb[39].mxu0  ;;  %v3998_v35 = vsel %vm395_vm2, %v3008_v46, -1e+30 }
 0x44c   : > { %v3988_v50 = vsel %vm395_vm2, %v1044_v47, -1e+30 }
 0x44e   : > { %1112 = vmax.xlane.f32.xlu1 %v3992_v11  ;;  %1114 = vmax.xlane.f32.xlu0 %v3988_v50 }
 0x450   : > { %v3011_v24 = vpop.f32.mrb[40].mxu0 }
 0x451   : > { %v1057_v25 = vpop.f32.mrb[41].mxu0  ;;  %v4002_v30 = vsel %vm395_vm2, %v3011_v24, -1e+30 }
 0x452   : > { %1118 = vmax.xlane.f32.xlu1 %v3998_v35  ;;  %1124 = vmax.xlane.f32.xlu0 %v4002_v30  ;;  %v3012_v37 = vpop.f32.mrb[42].mxu0  ;;  %v4008_v6 = vsel %vm395_vm2, %v1057_v25, -1e+30 }
 0x453   : > { %v1060_v47 = vpop.f32.mrb[43].mxu0  ;;  %v4013_v46 = vsel %vm395_vm2, %v3012_v37, -1e+30 }
 0x454   : > { %v4023_v25 = vsel %vm395_vm2, %v1060_v47, -1e+30  ;;  %v4073_v47 = vpop.permute.xlu1 %1446 }
 0x456   : > { %1120 = vmax.xlane.f32.xlu1 %v4008_v6 }
 0x458   : > { %v3015_v4 = vpop.f32.mrb[44].mxu0 }
 0x459   : > { %v1073_v22 = vpop.f32.mrb[45].mxu0  ;;  %v4028_v37 = vsel %vm395_vm2, %v3015_v4, -1e+30 }
 0x45a   : > { %1126 = vmax.xlane.f32.xlu1 %v4013_v46  ;;  %v3016_v24 = vpop.f32.mrb[46].mxu0  ;;  %v4018_v12 = vsel %vm395_vm2, %v1073_v22, -1e+30 }
 0x45b   : > { %1128 = vmax.xlane.f32.xlu0 %v4018_v12  ;;  %v1076_v1 = vpop.f32.mrb[47].mxu0  ;;  %v4033_v8 = vsel %vm395_vm2, %v3016_v24, -1e+30 }
 0x45c   : > { %v4048_v4 = vsel %vm395_vm2, %v1076_v1, -1e+30  ;;  %v4066_v1 = vpop.permute.xlu0 %1444 }
 0x45e   : > { %1122 = vmax.xlane.f32.xlu1 %v4023_v25 }
 0x460   : > { %v4071_v22 = vpop.permute.xlu0 %1448 }
 0x462   : > { %1132 = vmax.xlane.f32.xlu1 %v4028_v37 }
 0x466   : > { %1134 = vmax.xlane.f32.xlu1 %v4033_v8 }
 0x471   : > { %1452 = vrot.lane.b32.xlu0 %v3636_v40, %s3548_s30 }
 0x477   : > { %1450 = vrot.lane.b32.xlu1 %v3638_v43, %s3548_s30 }
 0x47b   : > { %1428 = vrot.lane.b32.xlu1 %v3614_v20, %s3549_s5 }
 0x47f   : > { %1432 = vrot.lane.b32.xlu1 %v3628_v32, %s3549_s5 }
 0x483   : > { %1436 = vrot.lane.b32.xlu1 %v3640_v44, %s3549_s5 }
 0x487   : > { %1440 = vrot.lane.b32.xlu1 %v3652_v56, %s3549_s5 }
 0x48b   : > { %1741 = vrot.lane.b32.xlu1 %v3610_v15, %s3550_s6 }
 0x48f   : > { %1743 = vrot.lane.b32.xlu1 %v3626_v31, %s3550_s6 }
 0x490   : > { %1130 = vmax.xlane.f32.xlu0 %v4048_v4 }
 0x493   : > { %1747 = vrot.lane.b32.xlu1 %v3638_v43, %s3550_s6 }
 0x497   : > { %1749 = vrot.lane.b32.xlu1 %v3636_v40, %s3550_s6 }
 0x49b   : > { %1753 = vrot.lane.b32.xlu1 %v3648_v52, %s3550_s6 }
 0x49f   : > { %1961 = vrot.lane.b32.xlu1 %v3626_v31, %s3551_s7 }
 0x4a6   : > { %1454 = vrot.lane.b32.xlu0 %v3650_v55, %s3548_s30 }
 0x4aa   : > { %1456 = vrot.lane.b32.xlu0 %v3648_v52, %s3548_s30 }
 0x4ae   : > { %1426 = vrot.lane.b32.xlu0 %v3616_v21, %s3549_s5 }
 0x4b2   : > { %1430 = vrot.lane.b32.xlu0 %v3630_v33, %s3549_s5 }
 0x4b6   : > { %1434 = vrot.lane.b32.xlu0 %v3642_v45, %s3549_s5 }
 0x4ba   : > { %1438 = vrot.lane.b32.xlu0 %v3656_v57, %s3549_s5 }
 0x4be   : > { %1739 = vrot.lane.b32.xlu0 %v3612_v19, %s3550_s6 }
 0x4c2   : > { %1745 = vrot.lane.b32.xlu0 %v3624_v28, %s3550_s6 }
 0x4c6   : > { %1751 = vrot.lane.b32.xlu0 %v3650_v55, %s3550_s6 }
 0x4ca   : > { %1957 = vrot.lane.b32.xlu0 %v3612_v19, %s3551_s7 }
 0x4ce   : > { %1959 = vrot.lane.b32.xlu0 %v3610_v15, %s3551_s7 }
 0x4cf   : > { %v1109_v24 = vpop.xlane.xlu0 %1108 }
 0x4d0   : > { %v1138_v61 = vsub.f32 %v3963_v3, %v1109_v24 }
 0x4d2   : > { %v1107_v5 = vpop.xlane.xlu1 %1106  ;;  %1963 = vrot.lane.b32.xlu0 %v3624_v28, %s3551_s7  ;;  %v1156_v16 = vmul.f32 1.442695, %v1138_v61 }
 0x4d3   : > { %v1137_v10 = vsub.f32 %v3968_v13, %v1107_v5  ;;  %v1105_v0 = vpop.xlane.xlu0 %1104 }
 0x4d4   : > { %v1136_v2 = vsub.f32 %v3973_v36, %v1105_v0 }
 0x4d5   : > { %v1154_v53 = vmul.f32 1.442695, %v1137_v10 }
 0x4d6   : > { %v1152_v49 = vmul.f32 1.442695, %v1136_v2 }
 0x4d7   : > { %3311 = vpow2.f32 %v1154_v53  ;;  %v1117_v58 = vpop.xlane.xlu1 %1116  ;;  %v1111_v59 = vpop.xlane.xlu0 %1110 }
 0x4d8   : > { %3313 = vpow2.f32 %v1152_v49  ;;  %v1139_v17 = vsub.f32 %v3978_v39, %v1111_v59  ;;  %v1142_v29 = vsub.f32 %v3982_v7, %v1117_v58 }
 0x4d9   : > { %3315 = vpow2.f32 %v1156_v16 }
 0x4da   : > { %v1158_v63 = vmul.f32 1.442695, %v1139_v17  ;;  %v1164_v53 = vmul.f32 1.442695, %v1142_v29 }
 0x4db   : > { %v1113_v34 = vpop.xlane.xlu1 %1112  ;;  %v1115_v54 = vpop.xlane.xlu0 %1114 }
 0x4dc   : > { %v1140_v5 = vsub.f32 %v3992_v11, %v1113_v34  ;;  %v1141_v3 = vsub.f32 %v3988_v50, %v1115_v54  ;;  %3317 = vpow2.f32 %v1158_v63 }
 0x4de   : > { %v1160_v0 = vmul.f32 1.442695, %v1140_v5  ;;  %v1162_v2 = vmul.f32 1.442695, %v1141_v3 }
 0x4df   : > { %v1119_v10 = vpop.xlane.xlu1 %1118  ;;  %v1125_v29 = vpop.xlane.xlu0 %1124 }
 0x4e0   : > { %3319 = vpow2.f32 %v1160_v0  ;;  %v1143_v49 = vsub.f32 %v3998_v35, %v1119_v10  ;;  %v1146_v7 = vsub.f32 %v4002_v30, %v1125_v29  ;;  %v1483_v35 = vsel %vm452_vm1, %v3925_v42, 0 }
 0x4e1   : > { %v4087_v61 = vpop.eup %3311  ;;  %3321 = vpow2.f32 %v1162_v2 }
 0x4e2   : > { %v4089_v17 = vpop.eup %3313  ;;  %v1166_v58 = vmul.f32 1.442695, %v1143_v49  ;;  %3323 = vpow2.f32 %v1164_v53  ;;  %v1172_v0 = vmul.f32 1.442695, %v1146_v7 }
 0x4e3   : > { %v1121_v16 = vpop.xlane.xlu1 %1120  ;;  %v1216_v34 = vpack.c.bf16 %v4087_v61, %v4089_v17  ;;  %v4093_v63 = vpop.eup %3315 }
 0x4e4   : > { %3325 = vpow2.f32 %v1166_v58  ;;  %v1144_v54 = vsub.f32 %v4008_v6, %v1121_v16 }
 0x4e5   : > { %3033 = vmatprep.mubr.bf16.mxu1 %v1216_v34  ;;  %v1489_v34 = vsel %vm452_vm1, %v4073_v47, 0 }
 0x4e6   : > { %v4096_v59 = vpop.eup %3317  ;;  %v1168_v11 = vmul.f32 1.442695, %v1144_v54 }
 0x4e7   : > { %v1127_v13 = vpop.xlane.xlu1 %1126  ;;  %v1217_v39 = vpack.c.bf16 %v4096_v59, %v4093_v63 }
 0x4e8   : > { %v1147_v36 = vsub.f32 %v4013_v46, %v1127_v13  ;;  %3327 = vpow2.f32 %v1168_v11 }
 0x4e9   : > { %3034 = vmatmul.mubr.bf16.vlgmr.msra.gmra.mrb[16].mxu1 %v1217_v39 }
 0x4ea   : > { %v4102_v50 = vpop.eup %3319  ;;  %v1174_v6 = vmul.f32 1.442695, %v1147_v36  ;;  %3050 = vmatpush3.bf16.xpose.msra.mxu1 %v1483_v35  ;;  %v1492_v36 = vsel %vm452_vm1, %v4071_v22, 0 }
 0x4eb   : > { %v4106_v24 = vpop.eup %3321  ;;  %v1123_v5 = vpop.xlane.xlu1 %1122  ;;  %3230 = vmatprep.subr.msk.bf16.mxu1 %vm452_vm1, %v4066_v1 }
 0x4ec   : > { %v1145_v46 = vsub.f32 %v4023_v25, %v1123_v5  ;;  %v1218_v30 = vpack.c.bf16 %v4106_v24, %v4102_v50  ;;  %v4113_v3 = vpop.eup %3323  ;;  %3329 = vpow2.f32 %v1174_v6  ;;  %v1486_v25 = vsel %vm452_vm1, %v4066_v1, 0 }
 0x4ee   : > { %v4115_v2 = vpop.eup %3325  ;;  %v1170_v42 = vmul.f32 1.442695, %v1145_v46  ;;  %3037 = vmatprep.mubr.bf16.mxu1 %v1218_v30 }
 0x4ef   : > { %v1219_v53 = vpack.c.bf16 %v4115_v2, %v4113_v3  ;;  %v1133_v10 = vpop.xlane.xlu1 %1132 }
 0x4f0   : > { %3331 = vpow2.f32 %v1170_v42 }
 0x4f1   : > { %3333 = vpow2.f32 %v1172_v0  ;;  %3038 = vmatmul.mubr.bf16.gmra.mrb[20].mxu1 %v1219_v53 }
 0x4f2   : > { %3052 = vmatpush3.bf16.xpose.msra.mxu1 %v1486_v25  ;;  %v4123_v49 = vpop.eup %3327 }
 0x4f3   : > { %3231 = vmatprep.subr.msk.bf16.mxu1 %vm452_vm1, %v4073_v47  ;;  %v1135_v13 = vpop.xlane.xlu1 %1134  ;;  %v1129_v47 = vpop.xlane.xlu0 %1128 }
 0x4f4   : > { %v1148_v6 = vsub.f32 %v4018_v12, %v1129_v47  ;;  %v1151_v5 = vsub.f32 %v4033_v8, %v1135_v13 }
 0x4f6   : > { %v4125_v58 = vpop.eup %3329  ;;  %v1176_v46 = vmul.f32 1.442695, %v1148_v6  ;;  %v1182_v30 = vmul.f32 1.442695, %v1151_v5 }
 0x4f7   : > { %v1451_v39 = vpop.permute.xlu1 %1450  ;;  %v1453_v11 = vpop.permute.xlu0 %1452 }
 0x4f8   : > { %v1495_v7 = vsel %vm452_vm1, %v1451_v39, 0  ;;  %v1498_v35 = vsel %vm452_vm1, %v1453_v11, 0  ;;  %3335 = vpow2.f32 %v1176_v46 }
 0x4f9   : > { %3337 = vpow2.f32 %v1182_v30 }
 0x4fa   : > { %v4127_v16 = vpop.eup %3331  ;;  %3054 = vmatpush3.bf16.xpose.msra.mxu1 %v1489_v34 }
 0x4fb   : > { %v4131_v29 = vpop.eup %3333  ;;  %v1220_v1 = vpack.c.bf16 %v4127_v16, %v4123_v49  ;;  %3232 = vmatprep.subr.msk.bf16.mxu1 %vm452_vm1, %v4071_v22  ;;  %v1150_v22 = vsub.f32 %v4028_v37, %v1133_v10  ;;  %v1429_v34 = vpop.permute.xlu1 %1428 }
 0x4fc   : > { %v1221_v54 = vpack.c.bf16 %v4125_v58, %v4131_v29 }
 0x4fd   : > { %3041 = vmatprep.mubr.bf16.mxu1 %v1220_v1  ;;  %v1180_v53 = vmul.f32 1.442695, %v1150_v22 }
 0x4fe   : > { %3042 = vmatmul.mubr.bf16.gmra.mrb[24].mxu1 %v1221_v54 }
 0x4ff   : > { %v1433_v37 = vpop.permute.xlu1 %1432 }
 0x502   : > { %3056 = vmatpush3.bf16.xpose.msra.mxu1 %v1492_v36  ;;  %v4152_v54 = vpop.eup %3335 }
 0x503   : > { %3233 = vmatprep.subr.msk.bf16.mxu1 %vm452_vm1, %v1451_v39  ;;  %v4155_v13 = vpop.eup %3337  ;;  %v1437_v47 = vpop.permute.xlu1 %1436 }
 0x507   : > { %v1441_v5 = vpop.permute.xlu1 %1440 }
 0x50a   : > { %3058 = vmatpush3.bf16.xpose.msra.mxu1 %v1495_v7 }
 0x50b   : > { %3234 = vmatprep.subr.msk.bf16.mxu1 %vm452_vm1, %v1453_v11  ;;  %v1742_v46 = vpop.permute.xlu1 %1741 }
 0x512   : > { %3060 = vmatpush3.bf16.xpose.msra.mxu1 %v1498_v35 }
 0x51d   : > { %v1131_v0 = vpop.xlane.xlu0 %1130 }
 0x51e   : > { %v1149_v42 = vsub.f32 %v4048_v4, %v1131_v0  ;;  %v1744_v0 = vpop.permute.xlu1 %1743 }
 0x520   : > { %v1178_v25 = vmul.f32 1.442695, %v1149_v42 }
 0x521   : > { %v1455_v1 = vpop.permute.xlu0 %1454 }
 0x522   : > { %3339 = vpow2.f32 %v1178_v25  ;;  %3235 = vmatprep.subr.msk.bf16.mxu1 %vm452_vm1, %v1455_v1  ;;  %v1501_v12 = vsel %vm452_vm1, %v1455_v1, 0 }
 0x523   : > { %3341 = vpow2.f32 %v1180_v53  ;;  %3062 = vmatpush3.bf16.xpose.msra.mxu1 %v1501_v12  ;;  %v1748_v53 = vpop.permute.xlu1 %1747 }
 0x525   : > { %v1457_v8 = vpop.permute.xlu0 %1456 }
 0x526   : > { %3236 = vmatprep.subr.msk.bf16.mxu1 %vm452_vm1, %v1457_v8  ;;  %v1504_v4 = vsel %vm452_vm1, %v1457_v8, 0 }
 0x527   : > { %v1750_v25 = vpop.permute.xlu1 %1749 }
 0x529   : > { %v1427_v10 = vpop.permute.xlu0 %1426 }
 0x52b   : > { %3064 = vmatpush3.bf16.xpose.msra.mxu1 %v1504_v4  ;;  %v1754_v1 = vpop.permute.xlu1 %1753 }
 0x52c   : > { %v4157_v36 = vpop.eup %3339 }
 0x52d   : > { %v4159_v39 = vpop.eup %3341  ;;  %v1431_v7 = vpop.permute.xlu0 %1430  ;;  %v1222_v11 = vpack.c.bf16 %v4157_v36, %v4152_v54 }
 0x52e   : > { %v1223_v35 = vpack.c.bf16 %v4155_v13, %v4159_v39 }
 0x52f   : > { %3045 = vmatprep.mubr.bf16.mxu1 %v1222_v11 }
 0x530   : > { %3046 = vmatmul.mubr.bf16.gmra.mrb[28].mxu1 %v1223_v35 }
 0x531   : > { %3065 = vmatprep.mubr.msk.bf16.mxu1 %vm452_vm1, %v1427_v10  ;;  %v1435_v6 = vpop.permute.xlu0 %1434 }
 0x535   : > { %v1439_v22 = vpop.permute.xlu0 %1438 }
 0x538   : > { %3066 = vmatmul.mubr.msk.bf16.vlgmr.msra.gmra.mrb[32].mxu1 %vm452_vm1, %v1429_v34 }
 0x539   : > { %3069 = vmatprep.mubr.msk.bf16.mxu1 %vm452_vm1, %v1431_v7  ;;  %v1740_v30 = vpop.permute.xlu0 %1739 }
 0x53a   : > { %3081 = vmatprep.subr.bf16.mxu0 %v1740_v30 }
 0x53b   : > { %3082 = vmatpush3.bf16.msra.mxu0 %v1740_v30 }
 0x53c   : > { %3083 = vmatprep.subr.bf16.mxu0 %v1742_v46 }
 0x53d   : > { %v1746_v42 = vpop.permute.xlu0 %1745 }
 0x53f   : > { %3084 = vmatpush3.bf16.msra.mxu0 %v1742_v46 }
 0x540   : > { %3070 = vmatmul.mubr.msk.bf16.gmra.mrb[36].mxu1 %vm452_vm1, %v1433_v37  ;;  %3085 = vmatprep.subr.bf16.mxu0 %v1744_v0 }
 0x541   : > { %3073 = vmatprep.mubr.msk.bf16.mxu1 %vm452_vm1, %v1435_v6  ;;  %v1752_v34 = vpop.permute.xlu0 %1751 }
 0x543   : > { %3086 = vmatpush3.bf16.msra.mxu0 %v1744_v0 }
 0x544   : > { %3087 = vmatprep.subr.bf16.mxu0 %v1746_v42 }
 0x545   : > { %v4173_v12 = vpop.permute.xlu0 %1957 }
 0x547   : > { %3088 = vmatpush3.bf16.msra.mxu0 %v1746_v42 }
 0x548   : > { %3074 = vmatmul.mubr.msk.bf16.gmra.mrb[40].mxu1 %vm452_vm1, %v1437_v47  ;;  %3089 = vmatprep.subr.bf16.mxu0 %v1748_v53 }
 0x549   : > { %3077 = vmatprep.mubr.msk.bf16.mxu1 %vm452_vm1, %v1439_v22 }
 0x54b   : > { %3090 = vmatpush3.bf16.msra.mxu0 %v1748_v53 }
 0x54c   : > { %3091 = vmatprep.subr.bf16.mxu0 %v1750_v25 }
 0x54f   : > { %3092 = vmatpush3.bf16.msra.mxu0 %v1750_v25 }
 0x550   : > { %3078 = vmatmul.mubr.msk.bf16.gmra.mrb[44].mxu1 %vm452_vm1, %v1441_v5  ;;  %3093 = vmatprep.subr.bf16.mxu0 %v1752_v34 }
 0x553   : > { %3094 = vmatpush3.bf16.msra.mxu0 %v1752_v34 }
 0x554   : > { %3095 = vmatprep.subr.bf16.mxu0 %v1754_v1 }
 0x557   : > { %3096 = vmatpush3.bf16.msra.mxu0 %v1754_v1 }
 0x558   : > { %3237 = vmatprep.subr.msk.bf16.mxu0 %vm452_vm1, %v4173_v12 }
 0x5bc   : > { %v4177_v8 = vpop.f32.mrb[16].mxu1 }
 0x5bd   : > { %4881 = vst [vmem:[#allocation26_spill] sm:$0xff] %v4177_v8  ;;  %v4179_v37 = vpop.f32.mrb[17].mxu1 }
 0x5be   : > { %4882 = vst [vmem:[#allocation27_spill] sm:$0xff] %v4179_v37  ;;  %v4181_v10 = vpop.f32.mrb[18].mxu1 }
 0x5bf   : > { %4883 = vst [vmem:[#allocation28_spill] sm:$0xff] %v4181_v10  ;;  %v4183_v4 = vpop.f32.mrb[19].mxu1 }
 0x5c0   : > { %4884 = vst [vmem:[#allocation29_spill] sm:$0xff] %v4183_v4 }
 0x5c4   : > { %v4185_v47 = vpop.f32.mrb[20].mxu1 }
 0x5c5   : > { %4885 = vst [vmem:[#allocation30_spill] sm:$0xff] %v4185_v47  ;;  %v4187_v7 = vpop.f32.mrb[21].mxu1 }
 0x5c6   : > { %4886 = vst [vmem:[#allocation31_spill] sm:$0xff] %v4187_v7  ;;  %v4189_v11 = vpop.f32.mrb[22].mxu1 }
 0x5c7   : > { %4887 = vst [vmem:[#allocation32_spill] sm:$0xff] %v4189_v11  ;;  %v4191_v35 = vpop.f32.mrb[23].mxu1 }
 0x5c8   : > { %4888 = vst [vmem:[#allocation33_spill] sm:$0xff] %v4191_v35 }
 0x5d1   : > { %v4193_v6 = vpop.f32.mrb[24].mxu1 }
 0x5d2   : > { %4889 = vst [vmem:[#allocation34_spill] sm:$0xff] %v4193_v6  ;;  %v4195_v5 = vpop.f32.mrb[25].mxu1 }
 0x5d3   : > { %4890 = vst [vmem:[#allocation35_spill] sm:$0xff] %v4195_v5  ;;  %v4197_v22 = vpop.f32.mrb[26].mxu1 }
 0x5d4   : > { %4891 = vst [vmem:[#allocation36_spill] sm:$0xff] %v4197_v22  ;;  %v4199_v46 = vpop.f32.mrb[27].mxu1 }
 0x5d5   : > { %4892 = vst [vmem:[#allocation37_spill] sm:$0xff] %v4199_v46 }
 0x603   : > { %v4201_v30 = vpop.f32.mrb[28].mxu1 }
 0x604   : > { %4893 = vst [vmem:[#allocation38_spill] sm:$0xff] %v4201_v30  ;;  %v4203_v0 = vpop.f32.mrb[29].mxu1 }
 0x605   : > { %4894 = vst [vmem:[#allocation39_spill] sm:$0xff] %v4203_v0  ;;  %v4205_v42 = vpop.f32.mrb[30].mxu1 }
 0x606   : > { %4895 = vst [vmem:[#allocation40_spill] sm:$0xff] %v4205_v42  ;;  %v4207_v53 = vpop.f32.mrb[31].mxu1 }
 0x607   : > { %4896 = vst [vmem:[#allocation41_spill] sm:$0xff] %v4207_v53 }
 0x60b   : > { %v3067_v25 = vpop.f32.mrb[32].mxu1 }
 0x60c   : > { %v4211_v34 = vsel %vm395_vm2, %v3067_v25, -1e+30  ;;  %v1540_v1 = vpop.f32.mrb[33].mxu1 }
 0x60d   : > { %1623 = vmax.xlane.f32.xlu0 %v4211_v34  ;;  %v3068_v6 = vpop.f32.mrb[34].mxu1  ;;  %v4220_v30 = vsel %vm395_vm2, %v1540_v1, -1e+30 }
 0x60e   : > { %v1543_v22 = vpop.f32.mrb[35].mxu1  ;;  %v4226_v25 = vsel %vm395_vm2, %v3068_v6, -1e+30 }
 0x60f   : > { %v4216_v46 = vsel %vm395_vm2, %v1543_v22, -1e+30 }
 0x610   : > { %1621 = vmax.xlane.f32.xlu1 %v4216_v46 }
 0x611   : > { %1619 = vmax.xlane.f32.xlu0 %v4220_v30 }
 0x613   : > { %v3071_v42 = vpop.f32.mrb[36].mxu1 }
 0x614   : > { %v4230_v53 = vsel %vm395_vm2, %v3071_v42, -1e+30  ;;  %v1556_v0 = vpop.f32.mrb[37].mxu1 }
 0x615   : > { %1625 = vmax.xlane.f32.xlu0 %v4226_v25  ;;  %1631 = vmax.xlane.f32.xlu1 %v4230_v53  ;;  %v3072_v22 = vpop.f32.mrb[38].mxu1  ;;  %v4240_v11 = vsel %vm395_vm2, %v1556_v0, -1e+30 }
 0x616   : > { %v1559_v1 = vpop.f32.mrb[39].mxu1  ;;  %v4246_v42 = vsel %vm395_vm2, %v3072_v22, -1e+30 }
 0x617   : > { %v4236_v5 = vsel %vm395_vm2, %v1559_v1, -1e+30 }
 0x619   : > { %1627 = vmax.xlane.f32.xlu1 %v4240_v11  ;;  %1629 = vmax.xlane.f32.xlu0 %v4236_v5 }
 0x61b   : > { %v3075_v6 = vpop.f32.mrb[40].mxu1 }
 0x61c   : > { %v4250_v47 = vsel %vm395_vm2, %v3075_v6, -1e+30  ;;  %v1572_v35 = vpop.f32.mrb[41].mxu1 }
 0x61d   : > { %1633 = vmax.xlane.f32.xlu1 %v4246_v42  ;;  %1639 = vmax.xlane.f32.xlu0 %v4250_v47  ;;  %v3076_v0 = vpop.f32.mrb[42].mxu1  ;;  %v4256_v7 = vsel %vm395_vm2, %v1572_v35, -1e+30 }
 0x61e   : > { %v1575_v1 = vpop.f32.mrb[43].mxu1  ;;  %v4261_v22 = vsel %vm395_vm2, %v3076_v0, -1e+30 }
 0x61f   : > { %v4271_v35 = vsel %vm395_vm2, %v1575_v1, -1e+30 }
 0x621   : > { %1635 = vmax.xlane.f32.xlu1 %v4256_v7 }
 0x623   : > { %v3079_v4 = vpop.f32.mrb[44].mxu1 }
 0x624   : > { %v1588_v6 = vpop.f32.mrb[45].mxu1  ;;  %v4276_v0 = vsel %vm395_vm2, %v3079_v4, -1e+30 }
 0x625   : > { %v4265_v37 = vsel %vm395_vm2, %v1588_v6, -1e+30  ;;  %1641 = vmax.xlane.f32.xlu1 %v4261_v22  ;;  %v3080_v10 = vpop.f32.mrb[46].mxu1 }
 0x626   : > { %1643 = vmax.xlane.f32.xlu0 %v4265_v37  ;;  %v1591_v8 = vpop.f32.mrb[47].mxu1  ;;  %v4281_v6 = vsel %vm395_vm2, %v3080_v10, -1e+30 }
 0x627   : > { %v4296_v10 = vsel %vm395_vm2, %v1591_v8, -1e+30 }
 0x629   : > { %1637 = vmax.xlane.f32.xlu1 %v4271_v35 }
 0x62d   : > { %1647 = vmax.xlane.f32.xlu1 %v4276_v0 }
 0x631   : > { %1649 = vmax.xlane.f32.xlu1 %v4281_v6 }
 0x63c   : > { %1967 = vrot.lane.b32.xlu0 %v3636_v40, %s3551_s7 }
 0x642   : > { %1965 = vrot.lane.b32.xlu1 %v3638_v43, %s3551_s7 }
 0x646   : > { %1943 = vrot.lane.b32.xlu1 %v3614_v20, %s3552_s8 }
 0x64a   : > { %1947 = vrot.lane.b32.xlu1 %v3628_v32, %s3552_s8 }
 0x64e   : > { %1951 = vrot.lane.b32.xlu1 %v3640_v44, %s3552_s8 }
 0x652   : > { %1955 = vrot.lane.b32.xlu1 %v3652_v56, %s3552_s8 }
 0x656   : > { %2256 = vrot.lane.b32.xlu1 %v3610_v15, %s3553_s9  ;;  %v4315_v15 = vpop.permute.xlu0 %1959 }
 0x65a   : > { %2260 = vrot.lane.b32.xlu1 %v3624_v28, %s3553_s9  ;;  %v4319_v20 = vpop.permute.xlu0 %1963 }
 0x65b   : > { %1645 = vmax.xlane.f32.xlu0 %v4296_v10 }
 0x65e   : > { %2264 = vrot.lane.b32.xlu1 %v3636_v40, %s3553_s9 }
 0x671   : > { %1969 = vrot.lane.b32.xlu0 %v3650_v55, %s3551_s7 }
 0x675   : > { %1971 = vrot.lane.b32.xlu0 %v3648_v52, %s3551_s7 }
 0x679   : > { %1941 = vrot.lane.b32.xlu0 %v3616_v21, %s3552_s8  ;;  %v4321_v21 = vpop.permute.xlu1 %1961 }
 0x67d   : > { %1945 = vrot.lane.b32.xlu0 %v3630_v33, %s3552_s8 }
 0x681   : > { %1949 = vrot.lane.b32.xlu0 %v3642_v45, %s3552_s8 }
 0x685   : > { %1953 = vrot.lane.b32.xlu0 %v3656_v57, %s3552_s8 }
 0x689   : > { %2254 = vrot.lane.b32.xlu0 %v3612_v19, %s3553_s9 }
 0x68d   : > { %2258 = vrot.lane.b32.xlu0 %v3626_v31, %s3553_s9 }
 0x691   : > { %2262 = vrot.lane.b32.xlu0 %v3638_v43, %s3553_s9 }
 0x69a   : > { %v1624_v28 = vpop.xlane.xlu0 %1623 }
 0x69b   : > { %v1653_v44 = vsub.f32 %v4211_v34, %v1624_v28 }
 0x69d   : > { %v1622_v32 = vpop.xlane.xlu1 %1621  ;;  %v1671_v8 = vmul.f32 1.442695, %v1653_v44 }
 0x69e   : > { %v1652_v33 = vsub.f32 %v4216_v46, %v1622_v32  ;;  %v1620_v40 = vpop.xlane.xlu0 %1619 }
 0x69f   : > { %v1651_v19 = vsub.f32 %v4220_v30, %v1620_v40 }
 0x6a0   : > { %v1669_v45 = vmul.f32 1.442695, %v1652_v33 }
 0x6a1   : > { %v1667_v31 = vmul.f32 1.442695, %v1651_v19 }
 0x6a2   : > { %3343 = vpow2.f32 %v1669_v45  ;;  %v1632_v56 = vpop.xlane.xlu1 %1631  ;;  %v1626_v57 = vpop.xlane.xlu0 %1625 }
 0x6a3   : > { %3345 = vpow2.f32 %v1667_v31  ;;  %v1654_v43 = vsub.f32 %v4226_v25, %v1626_v57  ;;  %v1657_v1 = vsub.f32 %v4230_v53, %v1632_v56 }
 0x6a4   : > { %3347 = vpow2.f32 %v1671_v8 }
 0x6a5   : > { %v1673_v4 = vmul.f32 1.442695, %v1654_v43  ;;  %v1679_v32 = vmul.f32 1.442695, %v1657_v1 }
 0x6a6   : > { %v1628_v60 = vpop.xlane.xlu1 %1627  ;;  %v1630_v38 = vpop.xlane.xlu0 %1629 }
 0x6a7   : > { %v1655_v46 = vsub.f32 %v4240_v11, %v1628_v60  ;;  %v1656_v34 = vsub.f32 %v4236_v5, %v1630_v38  ;;  %3349 = vpow2.f32 %v1673_v4  ;;  %v1998_v4 = vsel %vm452_vm1, %v4173_v12, 0 }
 0x6a9   : > { %v1675_v30 = vmul.f32 1.442695, %v1655_v46  ;;  %v1677_v28 = vmul.f32 1.442695, %v1656_v34 }
 0x6aa   : > { %v1634_v33 = vpop.xlane.xlu1 %1633  ;;  %v1640_v11 = vpop.xlane.xlu0 %1639 }
 0x6ab   : > { %3351 = vpow2.f32 %v1675_v30  ;;  %v1658_v40 = vsub.f32 %v4246_v42, %v1634_v33  ;;  %v1661_v57 = vsub.f32 %v4250_v47, %v1640_v11 }
 0x6ac   : > { %v4331_v44 = vpop.eup %3343  ;;  %3353 = vpow2.f32 %v1677_v28 }
 0x6ad   : > { %v4333_v25 = vpop.eup %3345  ;;  %v1681_v53 = vmul.f32 1.442695, %v1658_v40  ;;  %3355 = vpow2.f32 %v1679_v32  ;;  %v1687_v30 = vmul.f32 1.442695, %v1661_v57 }
 0x6ae   : > { %v1636_v19 = vpop.xlane.xlu1 %1635  ;;  %v1731_v60 = vpack.c.bf16 %v4331_v44, %v4333_v25  ;;  %v4337_v38 = vpop.eup %3347 }
 0x6af   : > { %3357 = vpow2.f32 %v1681_v53  ;;  %v1659_v5 = vsub.f32 %v4256_v7, %v1636_v19 }
 0x6b0   : > { %3097 = vmatprep.mubr.bf16.mxu0 %v1731_v60  ;;  %v2004_v60 = vsel %vm452_vm1, %v4321_v21, 0 }
 0x6b1   : > { %v4340_v45 = vpop.eup %3349  ;;  %v1683_v43 = vmul.f32 1.442695, %v1659_v5 }
 0x6b2   : > { %v1642_v42 = vpop.xlane.xlu1 %1641  ;;  %v1732_v56 = vpack.c.bf16 %v4340_v45, %v4337_v38 }
 0x6b3   : > { %v1662_v31 = vsub.f32 %v4261_v22, %v1642_v42  ;;  %3359 = vpow2.f32 %v1683_v43 }
 0x6b4   : > { %3098 = vmatmul.mubr.bf16.vlgmr.msra.gmra.mrb[48].mxu0 %v1732_v56 }
 0x6b5   : > { %v4346_v8 = vpop.eup %3351  ;;  %v1689_v7 = vmul.f32 1.442695, %v1662_v31  ;;  %3114 = vmatpush3.bf16.xpose.msra.mxu0 %v1998_v4  ;;  %v2007_v31 = vsel %vm452_vm1, %v4319_v20, 0 }
 0x6b6   : > { %v4350_v1 = vpop.eup %3353  ;;  %v1638_v46 = vpop.xlane.xlu1 %1637  ;;  %3238 = vmatprep.subr.msk.bf16.mxu0 %vm452_vm1, %v4315_v15 }
 0x6b7   : > { %v1660_v22 = vsub.f32 %v4271_v35, %v1638_v46  ;;  %v1733_v47 = vpack.c.bf16 %v4350_v1, %v4346_v8  ;;  %v4357_v34 = vpop.eup %3355  ;;  %3361 = vpow2.f32 %v1689_v7  ;;  %v2001_v35 = vsel %vm452_vm1, %v4315_v15, 0 }
 0x6b9   : > { %v4359_v28 = vpop.eup %3357  ;;  %v1685_v12 = vmul.f32 1.442695, %v1660_v22  ;;  %3101 = vmatprep.mubr.bf16.mxu0 %v1733_v47 }
 0x6ba   : > { %v1734_v32 = vpack.c.bf16 %v4359_v28, %v4357_v34  ;;  %v1648_v33 = vpop.xlane.xlu1 %1647 }
 0x6bb   : > { %3363 = vpow2.f32 %v1685_v12 }
 0x6bc   : > { %3365 = vpow2.f32 %v1687_v30  ;;  %3102 = vmatmul.mubr.bf16.gmra.mrb[52].mxu0 %v1734_v32 }
 0x6bd   : > { %3116 = vmatpush3.bf16.xpose.msra.mxu0 %v2001_v35  ;;  %v4367_v40 = vpop.eup %3359 }
 0x6be   : > { %3239 = vmatprep.subr.msk.bf16.mxu0 %vm452_vm1, %v4321_v21  ;;  %v1650_v42 = vpop.xlane.xlu1 %1649  ;;  %v1644_v21 = vpop.xlane.xlu0 %1643 }
 0x6bf   : > { %v1663_v7 = vsub.f32 %v4265_v37, %v1644_v21  ;;  %v1666_v46 = vsub.f32 %v4281_v6, %v1650_v42 }
 0x6c1   : > { %v4369_v53 = vpop.eup %3361  ;;  %v1691_v22 = vmul.f32 1.442695, %v1663_v7  ;;  %v1697_v47 = vmul.f32 1.442695, %v1666_v46 }
 0x6c2   : > { %v1966_v56 = vpop.permute.xlu1 %1965  ;;  %v1968_v43 = vpop.permute.xlu0 %1967 }
 0x6c3   : > { %v2010_v57 = vsel %vm452_vm1, %v1966_v56, 0  ;;  %v2013_v4 = vsel %vm452_vm1, %v1968_v43, 0  ;;  %3367 = vpow2.f32 %v1691_v22 }
 0x6c4   : > { %3369 = vpow2.f32 %v1697_v47 }
 0x6c5   : > { %v4371_v19 = vpop.eup %3363  ;;  %3118 = vmatpush3.bf16.xpose.msra.mxu0 %v2004_v60 }
 0x6c6   : > { %v4375_v11 = vpop.eup %3365  ;;  %v1735_v15 = vpack.c.bf16 %v4371_v19, %v4367_v40  ;;  %3240 = vmatprep.subr.msk.bf16.mxu0 %vm452_vm1, %v4319_v20  ;;  %v1665_v20 = vsub.f32 %v4276_v0, %v1648_v33  ;;  %v1944_v37 = vpop.permute.xlu1 %1943 }
 0x6c7   : > { %v1736_v5 = vpack.c.bf16 %v4369_v53, %v4375_v11 }
 0x6c8   : > { %3105 = vmatprep.mubr.bf16.mxu0 %v1735_v15  ;;  %v1695_v32 = vmul.f32 1.442695, %v1665_v20 }
 0x6c9   : > { %3106 = vmatmul.mubr.bf16.gmra.mrb[56].mxu0 %v1736_v5 }
 0x6ca   : > { %v1948_v0 = vpop.permute.xlu1 %1947 }
 0x6cd   : > { %3120 = vmatpush3.bf16.xpose.msra.mxu0 %v2007_v31  ;;  %v4396_v5 = vpop.eup %3367 }
 0x6ce   : > { %3241 = vmatprep.subr.msk.bf16.mxu0 %vm452_vm1, %v1966_v56  ;;  %v4399_v42 = vpop.eup %3369 }
 0x6d5   : > { %3122 = vmatpush3.bf16.xpose.msra.mxu0 %v2010_v57 }
 0x6d6   : > { %3242 = vmatprep.subr.msk.bf16.mxu0 %vm452_vm1, %v1968_v43 }
 0x6dd   : > { %3124 = vmatpush3.bf16.xpose.msra.mxu0 %v2013_v4  ;;  %v1952_v4 = vpop.permute.xlu1 %1951 }
 0x6e1   : > { %v1956_v46 = vpop.permute.xlu1 %1955 }
 0x6e5   : > { %v2257_v47 = vpop.permute.xlu1 %2256 }
 0x6e8   : > { %v1646_v30 = vpop.xlane.xlu0 %1645 }
 0x6e9   : > { %v1664_v12 = vsub.f32 %v4296_v10, %v1646_v30 }
 0x6eb   : > { %v1693_v35 = vmul.f32 1.442695, %v1664_v12  ;;  %v2261_v12 = vpop.permute.xlu1 %2260 }
 0x6ec   : > { %v1970_v60 = vpop.permute.xlu0 %1969 }
 0x6ed   : > { %3371 = vpow2.f32 %v1693_v35  ;;  %3243 = vmatprep.subr.msk.bf16.mxu0 %vm452_vm1, %v1970_v60  ;;  %v2016_v15 = vsel %vm452_vm1, %v1970_v60, 0 }
 0x6ee   : > { %3373 = vpow2.f32 %v1695_v32  ;;  %3126 = vmatpush3.bf16.xpose.msra.mxu0 %v2016_v15 }
 0x6ef   : > { %v2265_v35 = vpop.permute.xlu1 %2264 }
 0x6f0   : > { %v1972_v6 = vpop.permute.xlu0 %1971 }
 0x6f1   : > { %3244 = vmatprep.subr.msk.bf16.mxu0 %vm452_vm1, %v1972_v6  ;;  %v2019_v10 = vsel %vm452_vm1, %v1972_v6, 0 }
 0x6f4   : > { %v1942_v33 = vpop.permute.xlu0 %1941 }
 0x6f6   : > { %3128 = vmatpush3.bf16.xpose.msra.mxu0 %v2019_v10 }
 0x6f7   : > { %v4401_v31 = vpop.eup %3371 }
 0x6f8   : > { %v4403_v56 = vpop.eup %3373  ;;  %v1946_v21 = vpop.permute.xlu0 %1945  ;;  %v1737_v57 = vpack.c.bf16 %v4401_v31, %v4396_v5 }
 0x6f9   : > { %v1738_v43 = vpack.c.bf16 %v4399_v42, %v4403_v56 }
 0x6fa   : > { %3109 = vmatprep.mubr.bf16.mxu0 %v1737_v57 }
 0x6fb   : > { %3110 = vmatmul.mubr.bf16.gmra.mrb[60].mxu0 %v1738_v43 }
 0x6fc   : > { %3129 = vmatprep.mubr.msk.bf16.mxu0 %vm452_vm1, %v1942_v33  ;;  %v1950_v7 = vpop.permute.xlu0 %1949 }
 0x700   : > { %v1954_v20 = vpop.permute.xlu0 %1953 }
 0x703   : > { %3130 = vmatmul.mubr.msk.bf16.vlgmr.msra.gmra.mrb[64].mxu0 %vm452_vm1, %v1944_v37 }
 0x704   : > { %3133 = vmatprep.mubr.msk.bf16.mxu0 %vm452_vm1, %v1946_v21  ;;  %v2255_v22 = vpop.permute.xlu0 %2254 }
 0x705   : > { %3145 = vmatprep.subr.bf16.mxu0 %v2255_v22  ;;  %3197 = vmatprep.subr.bf16.mxu1 %v2255_v22 }
 0x706   : > { %3146 = vmatpush3.bf16.msra.mxu0 %v2255_v22  ;;  %3205 = vmatpush3.bf16.msra.mxu1 %v2255_v22 }
 0x707   : > { %3147 = vmatprep.subr.bf16.mxu0 %v2257_v47  ;;  %3198 = vmatprep.subr.bf16.mxu1 %v2257_v47 }
 0x708   : > { %v2259_v30 = vpop.permute.xlu0 %2258 }
 0x70a   : > { %3148 = vmatpush3.bf16.msra.mxu0 %v2257_v47  ;;  %3206 = vmatpush3.bf16.msra.mxu1 %v2257_v47 }
 0x70b   : > { %3134 = vmatmul.mubr.msk.bf16.gmra.mrb[68].mxu0 %vm452_vm1, %v1948_v0  ;;  %3149 = vmatprep.subr.bf16.mxu0 %v2259_v30 }
 0x70c   : > { %3199 = vmatprep.subr.bf16.mxu1 %v2259_v30  ;;  %3137 = vmatprep.mubr.msk.bf16.mxu0 %vm452_vm1, %v1950_v7  ;;  %v2263_v32 = vpop.permute.xlu0 %2262 }
 0x70e   : > { %3150 = vmatpush3.bf16.msra.mxu0 %v2259_v30  ;;  %3207 = vmatpush3.bf16.msra.mxu1 %v2259_v30 }
 0x70f   : > { %3151 = vmatprep.subr.bf16.mxu0 %v2261_v12  ;;  %3200 = vmatprep.subr.bf16.mxu1 %v2261_v12 }
 0x712   : > { %3152 = vmatpush3.bf16.msra.mxu0 %v2261_v12  ;;  %3208 = vmatpush3.bf16.msra.mxu1 %v2261_v12 }
 0x713   : > { %3138 = vmatmul.mubr.msk.bf16.gmra.mrb[72].mxu0 %vm452_vm1, %v1952_v4  ;;  %3153 = vmatprep.subr.bf16.mxu0 %v2263_v32 }
 0x714   : > { %3201 = vmatprep.subr.bf16.mxu1 %v2263_v32  ;;  %3141 = vmatprep.mubr.msk.bf16.mxu0 %vm452_vm1, %v1954_v20 }
 0x716   : > { %3154 = vmatpush3.bf16.msra.mxu0 %v2263_v32  ;;  %3209 = vmatpush3.bf16.msra.mxu1 %v2263_v32 }
 0x717   : > { %3155 = vmatprep.subr.bf16.mxu0 %v2265_v35  ;;  %3202 = vmatprep.subr.bf16.mxu1 %v2265_v35 }
 0x71a   : > { %3156 = vmatpush3.bf16.msra.mxu0 %v2265_v35  ;;  %3210 = vmatpush3.bf16.msra.mxu1 %v2265_v35 }
 0x71b   : > { %3142 = vmatmul.mubr.msk.bf16.gmra.mrb[76].mxu0 %vm452_vm1, %v1956_v46 }
 0x787   : > { %v4417_v60 = vpop.f32.mrb[48].mxu0 }
 0x788   : > { %4897 = vst [vmem:[#allocation42_spill] sm:$0xff] %v4417_v60  ;;  %v4419_v15 = vpop.f32.mrb[49].mxu0 }
 0x789   : > { %v4421_v37 = vpop.f32.mrb[50].mxu0 }
 0x78a   : > { %4898 = vst [vmem:[#allocation43_spill] sm:$0xff] %v4421_v37  ;;  %v4423_v6 = vpop.f32.mrb[51].mxu0 }
 0x78b   : > { %4899 = vst [vmem:[#allocation44_spill] sm:$0xff] %v4423_v6 }
 0x78f   : > { %v4425_v0 = vpop.f32.mrb[52].mxu0 }
 0x790   : > { %4900 = vst [vmem:[#allocation45_spill] sm:$0xff] %v4425_v0  ;;  %v4427_v33 = vpop.f32.mrb[53].mxu0 }
 0x791   : > { %4901 = vst [vmem:[#allocation46_spill] sm:$0xff] %v4427_v33  ;;  %v4429_v10 = vpop.f32.mrb[54].mxu0 }
 0x792   : > { %4902 = vst [vmem:[#allocation47_spill] sm:$0xff] %v4429_v10  ;;  %v4431_v21 = vpop.f32.mrb[55].mxu0 }
 0x793   : > { %4903 = vst [vmem:[#allocation48_spill] sm:$0xff] %v4431_v21 }
 0x79c   : > { %v4433_v57 = vpop.f32.mrb[56].mxu0 }
 0x79d   : > { %4904 = vst [vmem:[#allocation49_spill] sm:$0xff] %v4433_v57  ;;  %v4435_v43 = vpop.f32.mrb[57].mxu0 }
 0x79e   : > { %4905 = vst [vmem:[#allocation50_spill] sm:$0xff] %v4435_v43  ;;  %v4437_v4 = vpop.f32.mrb[58].mxu0 }
 0x79f   : > { %4906 = vst [vmem:[#allocation51_spill] sm:$0xff] %v4437_v4  ;;  %v4439_v7 = vpop.f32.mrb[59].mxu0 }
 0x7a0   : > { %4907 = vst [vmem:[#allocation52_spill] sm:$0xff] %v4439_v7 }
 0x7ce   : > { %v4441_v46 = vpop.f32.mrb[60].mxu0 }
 0x7cf   : > { %4908 = vst [vmem:[#allocation53_spill] sm:$0xff] %v4441_v46  ;;  %v4443_v20 = vpop.f32.mrb[61].mxu0 }
 0x7d0   : > { %4909 = vst [vmem:[#allocation54_spill] sm:$0xff] %v4443_v20  ;;  %v4445_v22 = vpop.f32.mrb[62].mxu0 }
 0x7d1   : > { %4910 = vst [vmem:[#allocation55_spill] sm:$0xff] %v4445_v22  ;;  %v4447_v47 = vpop.f32.mrb[63].mxu0 }
 0x7d2   : > { %4911 = vst [vmem:[#allocation56_spill] sm:$0xff] %v4447_v47 }
 0x7d6   : > { %v3131_v30 = vpop.f32.mrb[64].mxu0 }
 0x7d7   : > { %v4451_v12 = vsel %vm395_vm2, %v3131_v30, -1e+30  ;;  %v2055_v32 = vpop.f32.mrb[65].mxu0 }
 0x7d8   : > { %v4455_v35 = vsel %vm395_vm2, %v2055_v32, -1e+30  ;;  %2138 = vmax.xlane.f32.xlu1 %v4451_v12  ;;  %v3132_v4 = vpop.f32.mrb[66].mxu0 }
 0x7d9   : > { %2134 = vmax.xlane.f32.xlu0 %v4455_v35  ;;  %v2058_v46 = vpop.f32.mrb[67].mxu0  ;;  %v4461_v22 = vsel %vm395_vm2, %v3132_v4, -1e+30 }
 0x7da   : > { %v4466_v30 = vsel %vm395_vm2, %v2058_v46, -1e+30 }
 0x7dc   : > { %2140 = vmax.xlane.f32.xlu1 %v4461_v22 }
 0x7de   : > { %v3135_v47 = vpop.f32.mrb[68].mxu0 }
 0x7df   : > { %v2071_v20 = vpop.f32.mrb[69].mxu0  ;;  %v4476_v4 = vsel %vm395_vm2, %v3135_v47, -1e+30 }
 0x7e0   : > { %v4470_v32 = vsel %vm395_vm2, %v2071_v20, -1e+30  ;;  %2136 = vmax.xlane.f32.xlu1 %v4466_v30  ;;  %v3136_v7 = vpop.f32.mrb[70].mxu0 }
 0x7e1   : > { %2142 = vmax.xlane.f32.xlu0 %v4470_v32  ;;  %v2074_v57 = vpop.f32.mrb[71].mxu0  ;;  %v4481_v46 = vsel %vm395_vm2, %v3136_v7, -1e+30 }
 0x7e2   : > { %v4486_v21 = vsel %vm395_vm2, %v2074_v57, -1e+30 }
 0x7e4   : > { %2146 = vmax.xlane.f32.xlu1 %v4476_v4 }
 0x7e6   : > { %v3139_v10 = vpop.f32.mrb[72].mxu0 }
 0x7e7   : > { %v2087_v0 = vpop.f32.mrb[73].mxu0  ;;  %v4491_v33 = vsel %vm395_vm2, %v3139_v10, -1e+30 }
 0x7e8   : > { %2148 = vmax.xlane.f32.xlu1 %v4481_v46  ;;  %v3140_v20 = vpop.f32.mrb[74].mxu0 }
 0x7e9   : > { %v2090_v43 = vpop.f32.mrb[75].mxu0 }
 0x7ea   : > { %v4496_v6 = vsel %vm395_vm2, %v2090_v43, -1e+30  ;;  %v4515_v43 = vsel %vm395_vm2, %v2087_v0, -1e+30 }
 0x7ec   : > { %2144 = vmax.xlane.f32.xlu1 %v4486_v21 }
 0x7ee   : > { %v3143_v47 = vpop.f32.mrb[76].mxu0 }
 0x7ef   : > { %v2103_v37 = vpop.f32.mrb[77].mxu0  ;;  %v4501_v57 = vsel %vm395_vm2, %v3143_v47, -1e+30 }
 0x7f0   : > { %2154 = vmax.xlane.f32.xlu1 %v4491_v33  ;;  %v3144_v7 = vpop.f32.mrb[78].mxu0  ;;  %v4508_v10 = vsel %vm395_vm2, %v2103_v37, -1e+30 }
 0x7f1   : > { %v2106_v60 = vpop.f32.mrb[79].mxu0 }
 0x7f2   : > { %v4525_v37 = vsel %vm395_vm2, %v2106_v60, -1e+30 }
 0x7f4   : > { %2152 = vmax.xlane.f32.xlu1 %v4496_v6 }
 0x7f7   : > { %2266 = vrot.lane.b32.xlu0 %v3650_v55, %s3553_s9  ;;  %v4520_v55 = vsel %vm395_vm2, %v3140_v20, -1e+30 }
 0x7f8   : > { %2162 = vmax.xlane.f32.xlu1 %v4501_v57 }
 0x7fc   : > { %2158 = vmax.xlane.f32.xlu1 %v4508_v10 }
 0x80d   : > { %2268 = vrot.lane.b32.xlu1 %v3648_v52, %s3553_s9  ;;  %v4530_v52 = vsel %vm395_vm2, %v3144_v7, -1e+30 }
 0x816   : > { %2150 = vmax.xlane.f32.xlu0 %v4515_v43 }
 0x81a   : > { %2156 = vmax.xlane.f32.xlu0 %v4520_v55 }
 0x81e   : > { %2160 = vmax.xlane.f32.xlu0 %v4525_v37 }
 0x822   : > { %2164 = vmax.xlane.f32.xlu0 %v4530_v52 }
 0x826   : > { %1186 = vadd.xlane.f32.xlu0 %v4087_v61 }
 0x82a   : > { %1188 = vadd.xlane.f32.xlu0 %v4093_v63 }
 0x82e   : > { %1190 = vadd.xlane.f32.xlu0 %v4096_v59 }
 0x831   : > { %1184 = vadd.xlane.f32.xlu1 %v4089_v17 }
 0x832   : > { %1699 = vadd.xlane.f32.xlu0 %v4333_v25 }
 0x835   : > { %1192 = vadd.xlane.f32.xlu1 %v4102_v50 }
 0x836   : > { %1701 = vadd.xlane.f32.xlu0 %v4331_v44 }
 0x839   : > { %1196 = vadd.xlane.f32.xlu1 %v4113_v3 }
 0x83a   : > { %1703 = vadd.xlane.f32.xlu0 %v4337_v38 }
 0x83d   : > { %1707 = vadd.xlane.f32.xlu1 %v4346_v8 }
 0x83e   : > { %1705 = vadd.xlane.f32.xlu0 %v4340_v45 }
 0x841   : > { %1711 = vadd.xlane.f32.xlu1 %v4357_v34 }
 0x842   : > { %1194 = vadd.xlane.f32.xlu0 %v4106_v24 }
 0x845   : > { %1200 = vadd.xlane.f32.xlu1 %v4123_v49 }
 0x846   : > { %1198 = vadd.xlane.f32.xlu0 %v4115_v2 }
 0x849   : > { %1204 = vadd.xlane.f32.xlu1 %v4131_v29 }
 0x84a   : > { %1709 = vadd.xlane.f32.xlu0 %v4350_v1 }
 0x84d   : > { %1715 = vadd.xlane.f32.xlu1 %v4367_v40 }
 0x84e   : > { %1713 = vadd.xlane.f32.xlu0 %v4359_v28 }
 0x851   : > { %1719 = vadd.xlane.f32.xlu1 %v4375_v11 }
 0x852   : > { %1202 = vadd.xlane.f32.xlu0 %v4127_v16 }
 0x855   : > { %1208 = vadd.xlane.f32.xlu1 %v4152_v54 }
 0x856   : > { %1206 = vadd.xlane.f32.xlu0 %v4125_v58 }
 0x859   : > { %1212 = vadd.xlane.f32.xlu1 %v4159_v39 }
 0x85a   : > { %1717 = vadd.xlane.f32.xlu0 %v4371_v19 }
 0x85d   : > { %1723 = vadd.xlane.f32.xlu1 %v4396_v5 }
 0x85e   : > { %1721 = vadd.xlane.f32.xlu0 %v4369_v53 }
 0x861   : > { %1727 = vadd.xlane.f32.xlu1 %v4403_v56 }
 0x862   : > { %1210 = vadd.xlane.f32.xlu0 %v4157_v36 }
 0x865   : > { %v2139_v26 = vpop.xlane.xlu1 %2138  ;;  %694 = vadd.xlane.f32.xlu1 %v3841_v41 }
 0x866   : > { %v2168_v61 = vsub.f32 %v4451_v12, %v2139_v26  ;;  %1214 = vadd.xlane.f32.xlu0 %v4155_v13  ;;  %v2135_v17 = vpop.xlane.xlu0 %2134 }
 0x867   : > { %v2166_v63 = vsub.f32 %v4455_v35, %v2135_v17 }
 0x868   : > { %v2186_v50 = vmul.f32 1.442695, %v2168_v61 }
 0x869   : > { %v2141_v59 = vpop.xlane.xlu1 %2140  ;;  %698 = vadd.xlane.f32.xlu1 %v3845_v48  ;;  %v2182_v24 = vmul.f32 1.442695, %v2166_v63 }
 0x86a   : > { %1725 = vadd.xlane.f32.xlu0 %v4401_v31  ;;  %3375 = vpow2.f32 %v2186_v50  ;;  %v2169_v49 = vsub.f32 %v4461_v22, %v2141_v59 }
 0x86b   : > { %3377 = vpow2.f32 %v2182_v24 }
 0x86c   : > { %v2188_v54 = vmul.f32 1.442695, %v2169_v49 }
 0x86d   : > { %v2137_v3 = vpop.xlane.xlu1 %2136  ;;  %702 = vadd.xlane.f32.xlu1 %v3854_v9 }
 0x86e   : > { %v2167_v41 = vsub.f32 %v4466_v30, %v2137_v3  ;;  %1729 = vadd.xlane.f32.xlu0 %v4399_v42  ;;  %v2143_v2 = vpop.xlane.xlu0 %2142 }
 0x86f   : > { %v2170_v48 = vsub.f32 %v4470_v32, %v2143_v2 }
 0x870   : > { %v2184_v58 = vmul.f32 1.442695, %v2167_v41 }
 0x871   : > { %v2147_v16 = vpop.xlane.xlu1 %2146  ;;  %706 = vadd.xlane.f32.xlu1 %v3865_v18  ;;  %v2190_v39 = vmul.f32 1.442695, %v2170_v48 }
 0x872   : > { %3379 = vpow2.f32 %v2184_v58  ;;  %v2172_v29 = vsub.f32 %v4476_v4, %v2147_v16  ;;  %696 = vadd.xlane.f32.xlu0 %v3839_v51  ;;  %v2267_v9 = vpop.permute.xlu0 %2266 }
 0x873   : > { %3157 = vmatprep.subr.bf16.mxu0 %v2267_v9  ;;  %3203 = vmatprep.subr.bf16.mxu1 %v2267_v9 }
 0x874   : > { %v2194_v13 = vmul.f32 1.442695, %v2172_v29  ;;  %3158 = vmatpush3.bf16.msra.mxu0 %v2267_v9  ;;  %3211 = vmatpush3.bf16.msra.mxu1 %v2267_v9  ;;  %v3376_v44 = vpop.eup %3375  ;;  %v4912_v29 = vld [vmem:[#allocation5_spill] sm:$0xff] }
 0x875   : > { %v2149_v36 = vpop.xlane.xlu1 %2148  ;;  %710 = vadd.xlane.f32.xlu1 %v3875_v27  ;;  %v3378_v38 = vpop.eup %3377 }
 0x876   : > { %3381 = vpow2.f32 %v2194_v13  ;;  %700 = vadd.xlane.f32.xlu0 %v3848_v62  ;;  %v2173_v18 = vsub.f32 %v4481_v46, %v2149_v36  ;;  %v4913_v36 = vld [vmem:[#allocation6_spill] sm:$0xff] }
 0x877   : > { %3383 = vpow2.f32 %v2188_v54 }
 0x878   : > { %3385 = vpow2.f32 %v2190_v39  ;;  %v2196_v45 = vmul.f32 1.442695, %v2173_v18 }
 0x879   : > { %v2145_v25 = vpop.xlane.xlu1 %2144  ;;  %2218 = vadd.xlane.f32.xlu1 %v3376_v44 }
 0x87a   : > { %v2171_v51 = vsub.f32 %v4486_v21, %v2145_v25  ;;  %704 = vadd.xlane.f32.xlu0 %v3858_v14 }
 0x87c   : > { %v3380_v8 = vpop.eup %3379  ;;  %v2192_v1 = vmul.f32 1.442695, %v2171_v51 }
 0x87d   : > { %v2155_v27 = vpop.xlane.xlu1 %2154  ;;  %2214 = vadd.xlane.f32.xlu1 %v3378_v38  ;;  %v2246_v34 = vpack.c.bf16 %v3380_v8, %v3378_v38  ;;  %v4914_v38 = vld [vmem:[#allocation9_spill] sm:$0xff] }
 0x87e   : > { %3387 = vpow2.f32 %v2192_v1  ;;  %v2176_v62 = vsub.f32 %v4491_v33, %v2155_v27  ;;  %708 = vadd.xlane.f32.xlu0 %v3867_v23  ;;  %v4916_v1 = vld [vmem:[#allocation26_spill] sm:$0xff] }
 0x87f   : > { %3389 = vpow2.f32 %v2196_v45  ;;  %3161 = vmatprep.mubr.bf16.mxu0 %v2246_v34  ;;  %v4915_v45 = vld [vmem:[#allocation4_spill] sm:$0xff] }
 0x880   : > { %v3382_v28 = vpop.eup %3381  ;;  %v2202_v40 = vmul.f32 1.442695, %v2176_v62  ;;  %v4917_v34 = vld [vmem:[#allocation28_spill] sm:$0xff] }
 0x881   : > { %v3384_v53 = vpop.eup %3383  ;;  %v2153_v19 = vpop.xlane.xlu1 %2152  ;;  %2226 = vadd.xlane.f32.xlu1 %v3382_v28 }
 0x882   : > { %3391 = vpow2.f32 %v2202_v40  ;;  %2220 = vadd.xlane.f32.xlu0 %v3384_v53  ;;  %v3386_v14 = vpop.eup %3385  ;;  %v2247_v0 = vpack.c.bf16 %v3384_v53, %v3376_v44  ;;  %v2175_v21 = vsub.f32 %v4496_v6, %v2153_v19  ;;  %v4918_v19 = vld [vmem:[#allocation27_spill] sm:$0xff] }
 0x884   : > { %v2200_v22 = vmul.f32 1.442695, %v2175_v21 }
 0x885   : > { %v2163_v11 = vpop.xlane.xlu1 %2162  ;;  %2222 = vadd.xlane.f32.xlu1 %v3386_v14 }
 0x886   : > { %2216 = vadd.xlane.f32.xlu0 %v3380_v8  ;;  %v2180_v12 = vsub.f32 %v4501_v57, %v2163_v11  ;;  %3393 = vpow2.f32 %v2200_v22  ;;  %v4919_v11 = vld [vmem:[#allocation29_spill] sm:$0xff] }
 0x888   : > { %v3388_v5 = vpop.eup %3387  ;;  %v2210_v4 = vmul.f32 1.442695, %v2180_v12  ;;  %v4922_v12 = vld [vmem:[#allocation44_spill] sm:$0xff] }
 0x889   : > { %v3390_v42 = vpop.eup %3389  ;;  %v2159_v31 = vpop.xlane.xlu1 %2158  ;;  %v2248_v56 = vpack.c.bf16 %v3388_v5, %v3386_v14 }
 0x88a   : > { %2228 = vadd.xlane.f32.xlu0 %v3390_v42  ;;  %v2249_v33 = vpack.c.bf16 %v3390_v42, %v3382_v28  ;;  %v2178_v46 = vsub.f32 %v4508_v10, %v2159_v31  ;;  %v4920_v42 = vld [vmem:[#allocation3_spill] sm:$0xff] }
 0x88b   : > { %3165 = vmatprep.mubr.bf16.mxu1 %v2248_v56 }
 0x88c   : > { %v3392_v23 = vpop.eup %3391  ;;  %v2206_v26 = vmul.f32 1.442695, %v2178_v46 }
 0x88d   : > { %v2269_v60 = vpop.permute.xlu1 %2268  ;;  %2234 = vadd.xlane.f32.xlu1 %v3392_v23 }
 0x88e   : > { %2224 = vadd.xlane.f32.xlu0 %v3388_v5  ;;  %3159 = vmatprep.subr.bf16.mxu0 %v2269_v60 }
 0x88f   : > { %3204 = vmatprep.subr.bf16.mxu1 %v2269_v60  ;;  %3160 = vmatpush3.bf16.msra.mxu0 %v2269_v60 }
 0x890   : > { %3212 = vmatpush3.bf16.msra.mxu1 %v2269_v60  ;;  %v3394_v63 = vpop.eup %3393 }
 0x892   : > { %3162 = vmatmul.mubr.bf16.vlgmr.msra.gmra.mrb[80].mxu0 %v2247_v0 }
 0x893   : > { %3166 = vmatmul.mubr.bf16.vlgmr.msra.gmra.mrb[48].mxu1 %v2249_v33  ;;  %v4921_v33 = vld [vmem:[#allocation8_spill] sm:$0xff] }
 0x8a3   : > { %v2151_v35 = vpop.xlane.xlu0 %2150 }
 0x8a4   : > { %v2174_v30 = vsub.f32 %v4515_v43, %v2151_v35 }
 0x8a6   : > { %v2198_v32 = vmul.f32 1.442695, %v2174_v30 }
 0x8a7   : > { %v2157_v20 = vpop.xlane.xlu0 %2156 }
 0x8a8   : > { %3395 = vpow2.f32 %v2198_v32  ;;  %v2177_v47 = vsub.f32 %v4520_v55, %v2157_v20 }
 0x8a9   : > { %3397 = vpow2.f32 %v2210_v4  ;;  %v4923_v4 = vld [vmem:[#allocation7_spill] sm:$0xff] }
 0x8aa   : > { %v2204_v7 = vmul.f32 1.442695, %v2177_v47 }
 0x8ab   : > { %v2161_v61 = vpop.xlane.xlu0 %2160 }
 0x8ac   : > { %3399 = vpow2.f32 %v2204_v7  ;;  %v2179_v6 = vsub.f32 %v4525_v37, %v2161_v61  ;;  %v4924_v61 = vld [vmem:[#allocation42_spill] sm:$0xff] }
 0x8ad   : > { %3401 = vpow2.f32 %v2206_v26 }
 0x8ae   : > { %v2208_v57 = vmul.f32 1.442695, %v2179_v6 }
 0x8af   : > { %v2165_v17 = vpop.xlane.xlu0 %2164 }
 0x8b0   : > { %3403 = vpow2.f32 %v2208_v57  ;;  %v2181_v43 = vsub.f32 %v4530_v52, %v2165_v17  ;;  %v4925_v57 = vld [vmem:[#allocation43_spill] sm:$0xff] }
 0x8b2   : > { %v3396_v59 = vpop.eup %3395  ;;  %v2212_v10 = vmul.f32 1.442695, %v2181_v43 }
 0x8b3   : > { %2230 = vadd.xlane.f32.xlu1 %v3396_v59  ;;  %v1187_v50 = vpop.xlane.xlu0 %1186  ;;  %v2250_v24 = vpack.c.bf16 %v3394_v63, %v3396_v59  ;;  %v3398_v55 = vpop.eup %3397 }
 0x8b4   : > { %3405 = vpow2.f32 %v2212_v10 }
 0x8b5   : > { %3169 = vmatprep.mubr.bf16.mxu1 %v2250_v24 }
 0x8b6   : > { %v3400_v3 = vpop.eup %3399 }
 0x8b7   : > { %2242 = vadd.xlane.f32.xlu1 %v3398_v55  ;;  %2236 = vadd.xlane.f32.xlu0 %v3400_v3  ;;  %v1189_v41 = vpop.xlane.xlu0 %1188  ;;  %v2251_v37 = vpack.c.bf16 %v3400_v3, %v3392_v23  ;;  %v3402_v2 = vpop.eup %3401 }
 0x8b8   : > { %3407 = vrcp.f32 %v1189_v41 }
 0x8b9   : > { %3170 = vmatmul.mubr.bf16.gmra.mrb[52].mxu1 %v2251_v37 }
 0x8ba   : > { %v3404_v49 = vpop.eup %3403 }
 0x8bb   : > { %2238 = vadd.xlane.f32.xlu1 %v3402_v2  ;;  %2232 = vadd.xlane.f32.xlu0 %v3394_v63  ;;  %v1191_v52 = vpop.xlane.xlu0 %1190  ;;  %v2252_v58 = vpack.c.bf16 %v3404_v49, %v3402_v2 }
 0x8bc   : > { %3409 = vrcp.f32 %v1191_v52 }
 0x8bd   : > { %3411 = vrcp.f32 %v1187_v50  ;;  %3173 = vmatprep.mubr.bf16.mxu1 %v2252_v58  ;;  %v4926_v50 = vld [vmem:[#allocation31_spill] sm:$0xff]  ;;  %v4928_v58 = vld [vmem:[#allocation30_spill] sm:$0xff] }
 0x8be   : > { %v3406_v16 = vpop.eup %3405  ;;  %v1185_v48 = vpop.xlane.xlu1 %1184 }
 0x8bf   : > { %3413 = vrcp.f32 %v1185_v48  ;;  %714 = vadd.xlane.f32.xlu1 %v4912_v29  ;;  %2244 = vadd.xlane.f32.xlu0 %v3406_v16  ;;  %v1700_v9 = vpop.xlane.xlu0 %1699  ;;  %v2253_v54 = vpack.c.bf16 %v3406_v16, %v3398_v55  ;;  %v4927_v55 = vld [vmem:[#allocation33_spill] sm:$0xff]  ;;  %v4929_v48 = vld [vmem:[#allocation32_spill] sm:$0xff] }
 0x8c0   : > { %3415 = vrcp.f32 %v1700_v9 }
 0x8c1   : > { %3174 = vmatmul.mubr.bf16.gmra.mrb[56].mxu1 %v2253_v54 }
 0x8c2   : > { %v1193_v13 = vpop.xlane.xlu1 %1192  ;;  %v3408_v18 = vpop.eup %3407 }
 0x8c3   : > { %718 = vadd.xlane.f32.xlu1 %v4913_v36  ;;  %2240 = vadd.xlane.f32.xlu0 %v3404_v49  ;;  %v1702_v39 = vpop.xlane.xlu0 %1701  ;;  %v4595_v27 = vmul.f32 %v3408_v18, %v4916_v1  ;;  %v4930_v18 = vld [vmem:[#allocation46_spill] sm:$0xff] }
 0x8c4   : > { %3417 = vrcp.f32 %v1702_v39 }
 0x8c6   : > { %v3410_v44 = vpop.eup %3409  ;;  %v1197_v25 = vpop.xlane.xlu1 %1196 }
 0x8c7   : > { %v3412_v51 = vpop.eup %3411  ;;  %722 = vadd.xlane.f32.xlu1 %v4914_v38  ;;  %712 = vadd.xlane.f32.xlu0 %v4915_v45  ;;  %v1704_v8 = vpop.xlane.xlu0 %1703  ;;  %v4598_v62 = vmul.f32 %v3410_v44, %v4917_v34 }
 0x8c8   : > { %3419 = vrcp.f32 %v1704_v8  ;;  %v1362_v5 = vmul.f32 %v3412_v51, %v4919_v11 }
 0x8c9   : > { %v3414_v28 = vpop.eup %3413  ;;  %v1378_v40 = vpack.c.bf16 %v4598_v62, %v4595_v27 }
 0x8ca   : > { %v1708_v53 = vpop.xlane.xlu1 %1707  ;;  %v1361_v14 = vmul.f32 %v3414_v28, %v4918_v19  ;;  %v3416_v56 = vpop.eup %3415  ;;  %v4932_v28 = vld [vmem:[#allocation50_spill] sm:$0xff] }
 0x8cb   : > { %716 = vadd.xlane.f32.xlu0 %v4920_v42  ;;  %v1706_v31 = vpop.xlane.xlu0 %1705  ;;  %v1876_v22 = vmul.f32 %v3416_v56, %v4419_v15 }
 0x8cc   : > { %3421 = vrcp.f32 %v1706_v31  ;;  %v1377_v23 = vpack.c.bf16 %v1362_v5, %v1361_v14  ;;  %v4933_v14 = vld [vmem:[#allocation45_spill] sm:$0xff]  ;;  %v4934_v5 = vld [vmem:[#allocation47_spill] sm:$0xff] }
 0x8cd   : > { %3423 = vrcp.f32 %v1193_v13 }
 0x8ce   : > { %v3418_v60 = vpop.eup %3417  ;;  %v1712_v0 = vpop.xlane.xlu1 %1711 }
 0x8cf   : > { %720 = vadd.xlane.f32.xlu0 %v4921_v33  ;;  %v1195_v21 = vpop.xlane.xlu0 %1194  ;;  %v1877_v35 = vmul.f32 %v3418_v60, %v4922_v12  ;;  %v4935_v33 = vld [vmem:[#allocation49_spill] sm:$0xff]  ;;  %v4936_v12 = vld [vmem:[#allocation35_spill] sm:$0xff] }
 0x8d0   : > { %3425 = vrcp.f32 %v1195_v21 }
 0x8d1   : > { %v1892_v30 = vpack.c.bf16 %v1877_v35, %v1876_v22  ;;  %3427 = vrcp.f32 %v1197_v25  ;;  %v4931_v25 = vld [vmem:[#allocation48_spill] sm:$0xff] }
 0x8d2   : > { %v1201_v32 = vpop.xlane.xlu1 %1200  ;;  %v3420_v20 = vpop.eup %3419 }
 0x8d3   : > { %724 = vadd.xlane.f32.xlu0 %v4923_v4  ;;  %v1199_v46 = vpop.xlane.xlu0 %1198  ;;  %v1878_v6 = vmul.f32 %v3420_v20, %v4924_v61  ;;  %v4938_v20 = vld [vmem:[#allocation39_spill] sm:$0xff] }
 0x8d4   : > { %3429 = vrcp.f32 %v1199_v46 }
 0x8d5   : > { %3431 = vrcp.f32 %v1708_v53 }
 0x8d6   : > { %v3422_v47 = vpop.eup %3421  ;;  %v1205_v7 = vpop.xlane.xlu1 %1204 }
 0x8d7   : > { %v1710_v26 = vpop.xlane.xlu0 %1709  ;;  %v1879_v17 = vmul.f32 %v3422_v47, %v4925_v57  ;;  %v3424_v15 = vpop.eup %3423 }
 0x8d8   : > { %3433 = vrcp.f32 %v1710_v26  ;;  %1393 = vrot.lane.b32.xlu1 %v1377_v23, %s3554_s10  ;;  %v1365_v24 = vmul.f32 %v3424_v15, %v4926_v50  ;;  %v4939_v26 = vld [vmem:[#allocation34_spill] sm:$0xff]  ;;  %v4942_v50 = vld [vmem:[#allocation52_spill] sm:$0xff] }
 0x8d9   : > { %v1893_v43 = vpack.c.bf16 %v1879_v17, %v1878_v6  ;;  %3435 = vrcp.f32 %v1712_v0  ;;  %v4940_v6 = vld [vmem:[#allocation36_spill] sm:$0xff] }
 0x8da   : > { %v3426_v63 = vpop.eup %3425  ;;  %v1716_v59 = vpop.xlane.xlu1 %1715 }
 0x8db   : > { %3437 = vrcp.f32 %v1716_v59  ;;  %v1714_v10 = vpop.xlane.xlu0 %1713  ;;  %v1366_v3 = vmul.f32 %v3426_v63, %v4927_v55  ;;  %v3428_v41 = vpop.eup %3427  ;;  %v4941_v63 = vld [vmem:[#allocation38_spill] sm:$0xff] }
 0x8dc   : > { %3439 = vrcp.f32 %v1714_v10  ;;  %1908 = vrot.lane.b32.xlu1 %v1892_v30, %s3555_s11  ;;  %v1367_v16 = vmul.f32 %v3428_v41, %v4928_v58  ;;  %v4937_v30 = vld [vmem:[#allocation37_spill] sm:$0xff]  ;;  %v4944_v58 = vld [vmem:[#allocation51_spill] sm:$0xff] }
 0x8dd   : > { %v1379_v37 = vpack.c.bf16 %v1366_v3, %v1365_v24  ;;  %3441 = vrcp.f32 %v1201_v32 }
 0x8de   : > { %v3430_v2 = vpop.eup %3429  ;;  %v1720_v49 = vpop.xlane.xlu1 %1719 }
 0x8df   : > { %3443 = vrcp.f32 %v1720_v49  ;;  %v1203_v52 = vpop.xlane.xlu0 %1202  ;;  %v1368_v29 = vmul.f32 %v3430_v2, %v4929_v48  ;;  %v3432_v9 = vpop.eup %3431  ;;  %v4943_v2 = vld [vmem:[#allocation54_spill] sm:$0xff] }
 0x8e0   : > { %3445 = vrcp.f32 %v1203_v52  ;;  %1910 = vrot.lane.b32.xlu1 %v1893_v43, %s3555_s11  ;;  %v1880_v44 = vmul.f32 %v3432_v9, %v4930_v18  ;;  %v4946_v18 = vld [vmem:[#allocation41_spill] sm:$0xff] }
 0x8e1   : > { %v1380_v54 = vpack.c.bf16 %v1368_v29, %v1367_v16  ;;  %3447 = vrcp.f32 %v1205_v7 }
 0x8e2   : > { %v3434_v13 = vpop.eup %3433  ;;  %v1209_v36 = vpop.xlane.xlu1 %1208 }
 0x8e3   : > { %3449 = vrcp.f32 %v1209_v36  ;;  %v1207_v39 = vpop.xlane.xlu0 %1206  ;;  %v1881_v51 = vmul.f32 %v3434_v13, %v4931_v25  ;;  %v3436_v38 = vpop.eup %3435 }
 0x8e4   : > { %3451 = vrcp.f32 %v1207_v39  ;;  %1399 = vrot.lane.b32.xlu1 %v1380_v54, %s3554_s10  ;;  %v1882_v11 = vmul.f32 %v3436_v38, %v4933_v14  ;;  %v4945_v54 = vld [vmem:[#allocation53_spill] sm:$0xff]  ;;  %v4948_v14 = vld [vmem:[#allocation56_spill] sm:$0xff] }
 0x8e5   : > { %v3438_v45 = vpop.eup %3437  ;;  %v1894_v8 = vpack.c.bf16 %v1881_v51, %v1880_v44 }
 0x8e6   : > { %v3440_v1 = vpop.eup %3439  ;;  %v1213_v34 = vpop.xlane.xlu1 %1212  ;;  %v4622_v53 = vmul.f32 %v3438_v45, %v4932_v28  ;;  %v4947_v45 = vld [vmem:[#allocation40_spill] sm:$0xff] }
 0x8e7   : > { %3453 = vrcp.f32 %v1213_v34  ;;  %v1718_v19 = vpop.xlane.xlu0 %1717  ;;  %v1883_v42 = vmul.f32 %v3440_v1, %v4934_v5  ;;  %v3442_v31 = vpop.eup %3441 }
 0x8e8   : > { %3455 = vrcp.f32 %v1718_v19  ;;  %v1369_v35 = vmul.f32 %v3442_v31, %v4936_v12 }
 0x8e9   : > { %v3444_v56 = vpop.eup %3443  ;;  %1395 = vrot.lane.b32.xlu0 %v1378_v40, %s3554_s10  ;;  %v1895_v23 = vpack.c.bf16 %v1883_v42, %v1882_v11 }
 0x8ea   : > { %v3446_v60 = vpop.eup %3445  ;;  %v1724_v0 = vpop.xlane.xlu1 %1723  ;;  %v4631_v21 = vmul.f32 %v3444_v56, %v4935_v33 }
 0x8eb   : > { %3457 = vrcp.f32 %v1724_v0  ;;  %1914 = vrot.lane.b32.xlu1 %v1895_v23, %s3555_s11  ;;  %v1722_v22 = vpop.xlane.xlu0 %1721  ;;  %v1370_v32 = vmul.f32 %v3446_v60, %v4937_v30  ;;  %v3448_v4 = vpop.eup %3447  ;;  %v4949_v23 = vld [vmem:[#allocation55_spill] sm:$0xff] }
 0x8ec   : > { %3459 = vrcp.f32 %v1722_v22  ;;  %v1371_v61 = vmul.f32 %v3448_v4, %v4939_v26 }
 0x8ed   : > { %v3450_v46 = vpop.eup %3449  ;;  %1397 = vrot.lane.b32.xlu0 %v1379_v37, %s3554_s10  ;;  %v1381_v27 = vpack.c.bf16 %v1370_v32, %v1369_v35  ;;  %v4950_v35 = vld [vmem:[#allocation11_spill] sm:$0xff]  ;;  %v4951_v32 = vld [vmem:[#allocation13_spill] sm:$0xff] }
 0x8ee   : > { %v3452_v62 = vpop.eup %3451  ;;  %v1728_v40 = vpop.xlane.xlu1 %1727  ;;  %v4638_v47 = vmul.f32 %v3450_v46, %v4938_v20 }
 0x8ef   : > { %3461 = vrcp.f32 %v1728_v40  ;;  %v1211_v7 = vpop.xlane.xlu0 %1210  ;;  %v1372_v57 = vmul.f32 %v3452_v62, %v4940_v6  ;;  %v4952_v40 = vld [vmem:[#allocation10_spill] sm:$0xff] }
 0x8f0   : > { %3463 = vrcp.f32 %v1211_v7  ;;  %v4953_v7 = vld [vmem:[#allocation12_spill] sm:$0xff] }
 0x8f1   : > { %v3454_v17 = vpop.eup %3453  ;;  %1912 = vrot.lane.b32.xlu0 %v1894_v8, %s3555_s11  ;;  %v1382_v15 = vpack.c.bf16 %v1372_v57, %v1371_v61 }
 0x8f2   : > { %v3456_v43 = vpop.eup %3455  ;;  %v4644_v59 = vmul.f32 %v3454_v17, %v4941_v63  ;;  %v695_v3 = vpop.xlane.xlu1 %694  ;;  %v4954_v17 = vld [vmem:[#allocation15_spill] sm:$0xff] }
 0x8f3   : > { %1403 = vrot.lane.b32.xlu1 %v1382_v15, %s3554_s10  ;;  %v1215_v10 = vpop.xlane.xlu0 %1214  ;;  %v4648_v24 = vmul.f32 %v3456_v43, %v4942_v50  ;;  %v4955_v43 = vld [vmem:[#allocation17_spill] sm:$0xff] }
 0x8f4   : > { %3465 = vrcp.f32 %v1215_v10 }
 0x8f5   : > { %v3458_v55 = vpop.eup %3457  ;;  %1401 = vrot.lane.b32.xlu0 %v1381_v27, %s3554_s10  ;;  %v1896_v41 = vpack.c.bf16 %v4648_v24, %v4622_v53 }
 0x8f6   : > { %v3460_v37 = vpop.eup %3459  ;;  %v4654_v49 = vmul.f32 %v3458_v55, %v4943_v2  ;;  %v699_v36 = vpop.xlane.xlu1 %698  ;;  %v4957_v2 = vld [vmem:[#allocation16_spill] sm:$0xff] }
 0x8f7   : > { %v1726_v52 = vpop.xlane.xlu0 %1725  ;;  %v4657_v16 = vmul.f32 %v3460_v37, %v4944_v58 }
 0x8f8   : > { %3467 = vrcp.f32 %v1726_v52 }
 0x8f9   : > { %v3462_v48 = vpop.eup %3461  ;;  %v1897_v29 = vpack.c.bf16 %v4657_v16, %v4631_v21 }
 0x8fa   : > { %v3464_v9 = vpop.eup %3463  ;;  %v4662_v13 = vmul.f32 %v3462_v48, %v4945_v54  ;;  %v703_v1 = vpop.xlane.xlu1 %702 }
 0x8fb   : > { %v1730_v39 = vpop.xlane.xlu0 %1729  ;;  %v4665_v44 = vmul.f32 %v3464_v9, %v4946_v18 }
 0x8fc   : > { %3469 = vrcp.f32 %v1730_v39 }
 0x8fd   : > { %v1383_v25 = vpack.c.bf16 %v4665_v44, %v4638_v47  ;;  %3471 = vrcp.f32 %v695_v3  ;;  %v4956_v3 = vld [vmem:[#allocation14_spill] sm:$0xff] }
 0x8fe   : > { %v3466_v51 = vpop.eup %3465  ;;  %v707_v31 = vpop.xlane.xlu1 %706 }
 0x8ff   : > { %v697_v38 = vpop.xlane.xlu0 %696  ;;  %v4670_v8 = vmul.f32 %v3466_v51, %v4947_v45 }
 0x900   : > { %3473 = vrcp.f32 %v697_v38 }
 0x901   : > { %v1384_v34 = vpack.c.bf16 %v4670_v8, %v4644_v59  ;;  %3475 = vrcp.f32 %v699_v36 }
 0x902   : > { %v3468_v28 = vpop.eup %3467  ;;  %v711_v48 = vpop.xlane.xlu1 %710 }
 0x903   : > { %v701_v19 = vpop.xlane.xlu0 %700  ;;  %v4675_v11 = vmul.f32 %v3468_v28, %v4948_v14 }
 0x904   : > { %3477 = vrcp.f32 %v701_v19 }
 0x905   : > { %v1898_v5 = vpack.c.bf16 %v4675_v11, %v4654_v49  ;;  %3479 = vrcp.f32 %v703_v1 }
 0x906   : > { %v3470_v42 = vpop.eup %3469  ;;  %v2219_v9 = vpop.xlane.xlu1 %2218 }
 0x907   : > { %v705_v56 = vpop.xlane.xlu0 %704  ;;  %v4680_v60 = vmul.f32 %v3470_v42, %v4949_v23  ;;  %v3472_v0 = vpop.eup %3471 }
 0x908   : > { %3481 = vrcp.f32 %v705_v56  ;;  %v871_v30 = vmul.f32 %v3472_v0, %v4950_v35 }
 0x909   : > { %v1899_v33 = vpack.c.bf16 %v4680_v60, %v4662_v13  ;;  %3483 = vrcp.f32 %v707_v31 }
 0x90a   : > { %v3474_v22 = vpop.eup %3473  ;;  %v2215_v54 = vpop.xlane.xlu1 %2214 }
 0x90b   : > { %v709_v12 = vpop.xlane.xlu0 %708  ;;  %v872_v4 = vmul.f32 %v3474_v22, %v4951_v32  ;;  %v3476_v46 = vpop.eup %3475 }
 0x90c   : > { %3485 = vrcp.f32 %v709_v12  ;;  %v873_v20 = vmul.f32 %v3476_v46, %v4952_v40 }
 0x90d   : > { %v887_v27 = vpack.c.bf16 %v872_v4, %v871_v30  ;;  %3487 = vrcp.f32 %v711_v48 }
 0x90e   : > { %v3478_v62 = vpop.eup %3477  ;;  %v2227_v39 = vpop.xlane.xlu1 %2226  ;;  %3489 = vrcp.f32 %v2219_v9  ;;  %v4961_v9 = vld [vmem:[#allocation20_spill] sm:$0xff] }
 0x90f   : > { %895 = vst.msk [vmem:[#allocation2] sm:$0xff] %vm452_vm1, %v887_v27  ;;  %v874_v26 = vmul.f32 %v3478_v62, %v4953_v7  ;;  %v3480_v61 = vpop.eup %3479  ;;  %v2221_v36 = vpop.xlane.xlu0 %2220  ;;  %3491 = vrcp.f32 %v2215_v54 }
 0x910   : > { %v875_v15 = vmul.f32 %v3480_v61, %v4954_v17  ;;  %3493 = vrcp.f32 %v2227_v39 }
 0x911   : > { %v888_v6 = vpack.c.bf16 %v874_v26, %v873_v20  ;;  %3495 = vrcp.f32 %v2221_v36  ;;  %v3278_v36 = vld [vmem:[%s4848_s2 + $0x8] sm:$0xff]  }
 0x912   : > { %v3482_v57 = vpop.eup %3481  ;;  %v2223_v51 = vpop.xlane.xlu1 %2222 }
 0x913   : > { %896 = vst.msk [vmem:[#allocation2 + $0x8] sm:$0xff] %vm452_vm1, %v888_v6  ;;  %v876_v63 = vmul.f32 %v3482_v57, %v4955_v43  ;;  %v3484_v10 = vpop.eup %3483  ;;  %v2217_v18 = vpop.xlane.xlu0 %2216  ;;  %v3277_v57 = vld [vmem:[%s4848_s2] sm:$0xff]  }
 0x914   : > { %v877_v37 = vmul.f32 %v3484_v10, %v4956_v3  ;;  %3177 = vmatprep.subr.bf16.mxu1 %v3277_v57 }
 0x915   : > { %v889_v50 = vpack.c.bf16 %v876_v63, %v875_v15  ;;  %v4958_v15 = vld [vmem:[#allocation19_spill] sm:$0xff]  ;;  %v4959_v63 = vld [vmem:[#allocation21_spill] sm:$0xff]  ;;  %3178 = vmatpush3.bf16.msra.mxu1 %v3277_v57 }
 0x916   : > { %v3486_v55 = vpop.eup %3485  ;;  %3179 = vmatprep.subr.bf16.mxu1 %v3278_v36  ;;  %v4963_v57 = vld [vmem:[#allocation25_spill] sm:$0xff] }
 0x917   : > { %v878_v52 = vmul.f32 %v3486_v55, %v4957_v2  ;;  %897 = vst.msk [vmem:[#allocation2 + $0x10] sm:$0xff] %vm452_vm1, %v889_v50  ;;  %v2229_v38 = vpop.xlane.xlu0 %2228  ;;  %v3488_v4 = vpop.eup %3487 }
 0x918   : > { %v3490_v46 = vpop.eup %3489  ;;  %v879_v43 = vmul.f32 %v3488_v4, %v4958_v15 }
 0x919   : > { %v890_v58 = vpack.c.bf16 %v878_v52, %v877_v37  ;;  %v3492_v40 = vpop.eup %3491  ;;  %3180 = vmatpush3.bf16.msra.mxu1 %v3278_v36 }
 0x91a   : > { %v4696_v45 = vpop.xlane.xlu1 %2234  ;;  %v3494_v20 = vpop.eup %3493 }
 0x91b   : > { %898 = vst.msk [vmem:[#allocation2 + $0x18] sm:$0xff] %vm452_vm1, %v890_v58  ;;  %v2225_v1 = vpop.xlane.xlu0 %2224  ;;  %v3496_v7 = vpop.eup %3495  ;;  %v4960_v58 = vld [vmem:[#allocation18_spill] sm:$0xff] }
 0x940   : > { %v4698_v28 = vpop.xlane.xlu1 %2230 }
 0x944   : > { %v4700_v19 = vpop.xlane.xlu1 %2242  ;;  %v4702_v14 = vpop.xlane.xlu0 %2236 }
 0x948   : > { %v4704_v42 = vpop.xlane.xlu1 %2238  ;;  %v4706_v31 = vpop.xlane.xlu0 %2232 }
 0x94c   : > { %v715_v56 = vpop.xlane.xlu1 %714  ;;  %v4708_v23 = vpop.xlane.xlu0 %2244 }
 0x950   : > { %v719_v0 = vpop.xlane.xlu1 %718  ;;  %v4710_v22 = vpop.xlane.xlu0 %2240 }
 0x954   : > { %v723_v12 = vpop.xlane.xlu1 %722  ;;  %v713_v35 = vpop.xlane.xlu0 %712 }
 0x955   : > { %3497 = vrcp.f32 %v713_v35 }
 0x956   : > { %3499 = vrcp.f32 %v715_v56 }
 0x957   : > { %3501 = vrcp.f32 %v2223_v51 }
 0x958   : > { %v1394_v30 = vpop.permute.xlu1 %1393  ;;  %v717_v32 = vpop.xlane.xlu0 %716 }
 0x959   : > { %1418 = vst.msk [vmem:[#allocation2] sm:$0xff] %vm1417_vm3, %v1394_v30  ;;  %3503 = vrcp.f32 %v717_v32 }
 0x95a   : > { %3505 = vrcp.f32 %v2217_v18 }
 0x95b   : > { %3507 = vrcp.f32 %v719_v0 }
 0x95c   : > { %3509 = vrcp.f32 %v2229_v38  ;;  %v1909_v27 = vpop.permute.xlu1 %1908  ;;  %v721_v62 = vpop.xlane.xlu0 %720 }
 0x95d   : > { %1933 = vst.msk [vmem:[#allocation2] sm:$0xff] %vm1932_vm4, %v1909_v27  ;;  %3511 = vrcp.f32 %v721_v62 }
 0x95e   : > { %3513 = vrcp.f32 %v2225_v1 }
 0x95f   : > { %3515 = vrcp.f32 %v723_v12  ;;  %v3498_v26 = vpop.eup %3497 }
 0x960   : > { %v1911_v61 = vpop.permute.xlu1 %1910  ;;  %v725_v6 = vpop.xlane.xlu0 %724  ;;  %v880_v10 = vmul.f32 %v3498_v26, %v4959_v63  ;;  %v4962_v26 = vld [vmem:[#allocation23_spill] sm:$0xff] }
 0x961   : > { %v3500_v17 = vpop.eup %3499  ;;  %3517 = vrcp.f32 %v725_v6 }
 0x962   : > { %v3502_v50 = vpop.eup %3501  ;;  %v891_v3 = vpack.c.bf16 %v880_v10, %v879_v43  ;;  %v881_v48 = vmul.f32 %v3500_v17, %v4960_v58  ;;  %3519 = vrcp.f32 %v4696_v45 }
 0x963   : > { %v3504_v55 = vpop.eup %3503  ;;  %3521 = vrcp.f32 %v4698_v28 }
 0x964   : > { %v3506_v37 = vpop.eup %3505  ;;  %v1400_v2 = vpop.permute.xlu1 %1399  ;;  %v882_v54 = vmul.f32 %v3504_v55, %v4961_v9  ;;  %899 = vst.msk [vmem:[#allocation2 + $0x20] sm:$0xff] %vm452_vm1, %v891_v3  ;;  %3523 = vrcp.f32 %v4702_v14 }
 0x965   : > { %v1396_v52 = vpop.permute.xlu0 %1395  ;;  %v3508_v39 = vpop.eup %3507  ;;  %1421 = vst.msk [vmem:[#allocation2 + $0x18] sm:$0xff] %vm1417_vm3, %v1400_v2  ;;  %3525 = vrcp.f32 %v4706_v31 }
 0x966   : > { %1419 = vst.msk [vmem:[#allocation2 + $0x8] sm:$0xff] %vm1417_vm3, %v1396_v52  ;;  %v3163_v18 = vpop.f32.mrb[80].mxu0  ;;  %v3510_v51 = vpop.eup %3509  ;;  %v892_v56 = vpack.c.bf16 %v882_v54, %v881_v48  ;;  %v883_v6 = vmul.f32 %v3508_v39, %v4962_v26  ;;  %3527 = vrcp.f32 %v4700_v19 }
 0x967   : > { %1934 = vst.msk [vmem:[#allocation2 + $0x8] sm:$0xff] %vm1932_vm4, %v1911_v61  ;;  %v3167_v38 = vpop.f32.mrb[48].mxu1  ;;  %v2312_v1 = vpop.f32.mrb[81].mxu0  ;;  %v2393_v32 = vmul.f32 %v3490_v46, %v3163_v18  ;;  %3529 = vrcp.f32 %v4704_v42 }
 0x968   : > { %v3512_v0 = vpop.eup %3511  ;;  %v2328_v12 = vpop.f32.mrb[49].mxu1  ;;  %900 = vst.msk [vmem:[#allocation2 + $0x28] sm:$0xff] %vm452_vm1, %v892_v56  ;;  %v2397_v15 = vmul.f32 %v3494_v20, %v3167_v38  ;;  %v2391_v43 = vmul.f32 %v3492_v40, %v2312_v1  ;;  %v4964_v40 = vld [vmem:[#allocation22_spill] sm:$0xff]  ;;  %3531 = vrcp.f32 %v4708_v23 }
 0x969   : > { %v3164_v35 = vpop.f32.mrb[82].mxu0  ;;  %v3514_v30 = vpop.eup %3513  ;;  %v884_v17 = vmul.f32 %v3512_v0, %v4963_v57  ;;  %v2395_v2 = vmul.f32 %v3502_v50, %v2328_v12  ;;  %3533 = vrcp.f32 %v4710_v22 }
 0x96a   : > { %v2394_v4 = vmul.f32 %v3496_v7, %v3164_v35  ;;  %v3168_v27 = vpop.f32.mrb[50].mxu1  ;;  %v2315_v62 = vpop.f32.mrb[83].mxu0 }
 0x96b   : > { %v3516_v61 = vpop.eup %3515  ;;  %v2398_v63 = vmul.f32 %v3510_v51, %v3168_v27  ;;  %v2392_v10 = vmul.f32 %v3506_v37, %v2315_v62  ;;  %v2331_v55 = vpop.f32.mrb[51].mxu1  ;;  %v893_v7 = vpack.c.bf16 %v884_v17, %v883_v6  ;;  %v4965_v37 = vld [vmem:[#allocation24_spill] sm:$0xff] }
 0x96c   : > { %v1915_v3 = vpop.permute.xlu1 %1914  ;;  %v2408_v52 = vpack.c.bf16 %v2394_v4, %v2393_v32  ;;  %v2396_v58 = vmul.f32 %v3514_v30, %v2331_v55  ;;  %v1398_v46 = vpop.permute.xlu0 %1397  ;;  %v885_v20 = vmul.f32 %v3516_v61, %v4964_v40 }
 0x96d   : > { %1936 = vst.msk [vmem:[#allocation2 + $0x18] sm:$0xff] %vm1932_vm4, %v1915_v3  ;;  %v3518_v48 = vpop.eup %3517  ;;  %v2410_v9 = vpack.c.bf16 %v2398_v63, %v2397_v15  ;;  %v2407_v54 = vpack.c.bf16 %v2392_v10, %v2391_v43 }
 0x96e   : > { %1420 = vst.msk [vmem:[#allocation2 + $0x10] sm:$0xff] %vm1417_vm3, %v1398_v46  ;;  %v2409_v36 = vpack.c.bf16 %v2396_v58, %v2395_v2  ;;  %2425 = vrot.lane.b32.xlu1 %v2408_v52, %s3556_s18  ;;  %v886_v39 = vmul.f32 %v3518_v48, %v4965_v37  ;;  %v3520_v53 = vpop.eup %3519  ;;  %v2738_v46 = vld [vmem:[%s4849_s3] ss:$0 sm:$0xff] }
 0x96f   : > { %901 = vst.msk [vmem:[#allocation2 + $0x30] sm:$0xff] %vm452_vm1, %v893_v7  ;;  %2423 = vrot.lane.b32.xlu0 %v2407_v54, %s3556_s18  ;;  %v3522_v59 = vpop.eup %3521 }
 0x970   : > { %v1404_v50 = vpop.permute.xlu1 %1403  ;;  %v1913_v18 = vpop.permute.xlu0 %1912  ;;  %v894_v51 = vpack.c.bf16 %v886_v39, %v885_v20 }
 0x971   : > { %1423 = vst.msk [vmem:[#allocation2 + $0x28] sm:$0xff] %vm1417_vm3, %v1404_v50 }
 0x972   : > { %1935 = vst.msk [vmem:[#allocation2 + $0x10] sm:$0xff] %vm1932_vm4, %v1913_v18  ;;  %1918 = vrot.lane.b32.xlu1 %v1897_v29, %s3555_s11 }
 0x973   : > { %902 = vst.msk [vmem:[#allocation2 + $0x38] sm:$0xff] %vm452_vm1, %v894_v51  ;;  %1916 = vrot.lane.b32.xlu0 %v1896_v41, %s3555_s11  ;;  %v3524_v41 = vpop.eup %3523 }
 0x974   : > { %v1402_v38 = vpop.permute.xlu0 %1401  ;;  %v3526_v44 = vpop.eup %3525 }
 0x975   : > { %1422 = vst.msk [vmem:[#allocation2 + $0x20] sm:$0xff] %vm1417_vm3, %v1402_v38  ;;  %v3528_v19 = vpop.eup %3527 }
 0x976   : > { %2429 = vrot.lane.b32.xlu1 %v2410_v9, %s3556_s18  ;;  %v3530_v42 = vpop.eup %3529 }
 0x977   : > { %2427 = vrot.lane.b32.xlu0 %v2409_v36, %s3556_s18  ;;  %v3532_v22 = vpop.eup %3531 }
 0x978   : > { %v3534_v0 = vpop.eup %3533 }
 0x97a   : > { %1407 = vrot.lane.b32.xlu1 %v1384_v34, %s3554_s10 }
 0x97b   : > { %1405 = vrot.lane.b32.xlu0 %v1383_v25, %s3554_s10 }
 0x98c   : > { %v3171_v21 = vpop.f32.mrb[52].mxu1 }
 0x98d   : > { %v2401_v47 = vmul.f32 %v3520_v53, %v3171_v21  ;;  %v2344_v24 = vpop.f32.mrb[53].mxu1 }
 0x98e   : > { %v2399_v16 = vmul.f32 %v3522_v59, %v2344_v24  ;;  %v3172_v29 = vpop.f32.mrb[54].mxu1 }
 0x98f   : > { %v2402_v25 = vmul.f32 %v3524_v41, %v3172_v29  ;;  %v2347_v8 = vpop.f32.mrb[55].mxu1 }
 0x990   : > { %v2400_v34 = vmul.f32 %v3526_v44, %v2347_v8 }
 0x991   : > { %v2412_v45 = vpack.c.bf16 %v2402_v25, %v2401_v47 }
 0x992   : > { %v2411_v28 = vpack.c.bf16 %v2400_v34, %v2399_v16 }
 0x993   : > { %2433 = vrot.lane.b32.xlu1 %v2412_v45, %s3556_s18 }
 0x994   : > { %v3175_v14 = vpop.f32.mrb[56].mxu1  ;;  %2431 = vrot.lane.b32.xlu0 %v2411_v28, %s3556_s18 }
 0x995   : > { %v2405_v31 = vmul.f32 %v3528_v19, %v3175_v14  ;;  %v2360_v23 = vpop.f32.mrb[57].mxu1 }
 0x996   : > { %v2403_v1 = vmul.f32 %v3530_v42, %v2360_v23  ;;  %v3176_v56 = vpop.f32.mrb[58].mxu1 }
 0x997   : > { %v2406_v12 = vmul.f32 %v3532_v22, %v3176_v56  ;;  %v2363_v35 = vpop.f32.mrb[59].mxu1  ;;  %1922 = vrot.lane.b32.xlu1 %v1899_v33, %s3555_s11 }
 0x998   : > { %v2404_v30 = vmul.f32 %v3534_v0, %v2363_v35  ;;  %1920 = vrot.lane.b32.xlu0 %v1898_v5, %s3555_s11 }
 0x999   : > { %v2414_v32 = vpack.c.bf16 %v2406_v12, %v2405_v31 }
 0x99a   : > { %v2413_v4 = vpack.c.bf16 %v2404_v30, %v2403_v1 }
 0x99b   : > { %2437 = vrot.lane.b32.xlu1 %v2414_v32, %s3556_s18 }
 0x99c   : > { %2435 = vrot.lane.b32.xlu0 %v2413_v4, %s3556_s18 }
 0x9e0   : > { %v2426_v27 = vpop.permute.xlu1 %2425 }
 0x9e1   : > { %2449 = vst.msk [vmem:[#allocation2 + $0x8] sm:$0xff] %vm2447_vm5, %v2426_v27  ;;  %v2424_v62 = vpop.permute.xlu0 %2423 }
 0x9e2   : > { %2448 = vst.msk [vmem:[#allocation2] sm:$0xff] %vm2447_vm5, %v2424_v62 }
 0x9e4   : > { %v1919_v13 = vpop.permute.xlu1 %1918 }
 0x9e5   : > { %1938 = vst.msk [vmem:[#allocation2 + $0x28] sm:$0xff] %vm1932_vm4, %v1919_v13  ;;  %v1917_v60 = vpop.permute.xlu0 %1916 }
 0x9e6   : > { %1937 = vst.msk [vmem:[#allocation2 + $0x20] sm:$0xff] %vm1932_vm4, %v1917_v60 }
 0x9e8   : > { %v2430_v49 = vpop.permute.xlu1 %2429  ;;  %v2457_v33 = vld [vmem:[#allocation2 + $0x8] sm:$0xff] }
 0x9e9   : > { %2451 = vst.msk [vmem:[#allocation2 + $0x18] sm:$0xff] %vm2447_vm5, %v2430_v49  ;;  %v2428_v11 = vpop.permute.xlu0 %2427  ;;  %v2456_v5 = vld [vmem:[#allocation2] sm:$0xff] }
 0x9ea   : > { %2450 = vst.msk [vmem:[#allocation2 + $0x10] sm:$0xff] %vm2447_vm5, %v2428_v11  ;;  %3181 = vmatprep.mubr.msk.bf16.mxu1 %vm271_vm0, %v2456_v5 }
 0x9eb   : > { %3182 = vmatmul.mubr.msk.bf16.vlgmr.msra.gmra.mrb[60].mxu1 %vm271_vm0, %v2457_v33 }
 0x9ec   : > { %v1408_v26 = vpop.permute.xlu1 %1407 }
 0x9ed   : > { %1425 = vst.msk [vmem:[#allocation2 + $0x38] sm:$0xff] %vm1417_vm3, %v1408_v26  ;;  %v1406_v6 = vpop.permute.xlu0 %1405 }
 0x9ee   : > { %1424 = vst.msk [vmem:[#allocation2 + $0x30] sm:$0xff] %vm1417_vm3, %v1406_v6 }
 0x9f0   : > { %v2459_v17 = vld [vmem:[#allocation2 + $0x18] sm:$0xff] }
 0x9f1   : > { %v2458_v57 = vld [vmem:[#allocation2 + $0x10] sm:$0xff] }
 0x9f2   : > { %3185 = vmatprep.mubr.msk.bf16.mxu1 %vm271_vm0, %v2458_v57 }
 0x9f3   : > { %3186 = vmatmul.mubr.msk.bf16.gmra.mrb[64].mxu1 %vm271_vm0, %v2459_v17 }
 0xa05   : > { %v2434_v61 = vpop.permute.xlu1 %2433 }
 0xa06   : > { %2453 = vst.msk [vmem:[#allocation2 + $0x28] sm:$0xff] %vm2447_vm5, %v2434_v61  ;;  %v2432_v15 = vpop.permute.xlu0 %2431 }
 0xa07   : > { %2452 = vst.msk [vmem:[#allocation2 + $0x20] sm:$0xff] %vm2447_vm5, %v2432_v15 }
 0xa09   : > { %v1923_v43 = vpop.permute.xlu1 %1922 }
 0xa0a   : > { %1940 = vst.msk [vmem:[#allocation2 + $0x38] sm:$0xff] %vm1932_vm4, %v1923_v43  ;;  %v1921_v63 = vpop.permute.xlu0 %1920 }
 0xa0b   : > { %1939 = vst.msk [vmem:[#allocation2 + $0x30] sm:$0xff] %vm1932_vm4, %v1921_v63 }
 0xa0d   : > { %v2438_v10 = vpop.permute.xlu1 %2437  ;;  %v2461_v2 = vld [vmem:[#allocation2 + $0x28] sm:$0xff] }
 0xa0e   : > { %2455 = vst.msk [vmem:[#allocation2 + $0x38] sm:$0xff] %vm2447_vm5, %v2438_v10  ;;  %v2436_v55 = vpop.permute.xlu0 %2435  ;;  %v2460_v3 = vld [vmem:[#allocation2 + $0x20] sm:$0xff] }
 0xa0f   : > { %2454 = vst.msk [vmem:[#allocation2 + $0x30] sm:$0xff] %vm2447_vm5, %v2436_v55  ;;  %3189 = vmatprep.mubr.msk.bf16.mxu1 %vm271_vm0, %v2460_v3 }
 0xa10   : > { %3190 = vmatmul.mubr.msk.bf16.gmra.mrb[68].mxu1 %vm271_vm0, %v2461_v2 }
 0xa15   : > { %v2463_v58 = vld [vmem:[#allocation2 + $0x38] sm:$0xff] }
 0xa16   : > { %v2462_v52 = vld [vmem:[#allocation2 + $0x30] sm:$0xff] }
 0xa17   : > { %3193 = vmatprep.mubr.msk.bf16.mxu1 %vm271_vm0, %v2462_v52 }
 0xa18   : > { %3194 = vmatmul.mubr.msk.bf16.gmra.mrb[72].mxu1 %vm271_vm0, %v2463_v58 }
 0xabe   : > { %v3183_v7 = vpop.f32.mrb[60].mxu1 }
 0xabf   : > { %v2554_v48 = vadd.f32 %v3183_v7, %v2738_v46  ;;  %v2545_v9 = vpop.f32.mrb[61].mxu1 }
 0xac0   : > { %v2546_v54 = vadd.f32 %v2738_v46, %v2545_v9  ;;  %v3184_v36 = vpop.f32.mrb[62].mxu1 }
 0xac1   : > { %2610 = vst.msk [vmem:[%s4809_s24 + $0x10] sm:$0xff] %vm271_vm0, %v2554_v48  ;;  %v2557_v40 = vadd.f32 %v3184_v36, %v2738_v46  ;;  %v2548_v20 = vpop.f32.mrb[63].mxu1 }
 0xac2   : > { %2608 = vst.msk [vmem:[%s4809_s24] sm:$0xff] %vm271_vm0, %v2546_v54  ;;  %v2549_v37 = vadd.f32 %v2738_v46, %v2548_v20 }
 0xac3   : > { %2611 = vst.msk [vmem:[%s4809_s24 + $0x18] sm:$0xff] %vm271_vm0, %v2557_v40 }
 0xac4   : > { %2609 = vst.msk [vmem:[%s4809_s24 + $0x8] sm:$0xff] %vm271_vm0, %v2549_v37 }
 0xac6   : > { %v3187_v39 = vpop.f32.mrb[64].mxu1 }
 0xac7   : > { %v2570_v50 = vadd.f32 %v3187_v39, %v2738_v46  ;;  %v2561_v18 = vpop.f32.mrb[65].mxu1 }
 0xac8   : > { %v2562_v51 = vadd.f32 %v2738_v46, %v2561_v18  ;;  %v3188_v38 = vpop.f32.mrb[66].mxu1 }
 0xac9   : > { %2614 = vst.msk [vmem:[%s4809_s24 + $0x30] sm:$0xff] %vm271_vm0, %v2570_v50  ;;  %v2573_v53 = vadd.f32 %v3188_v38, %v2738_v46  ;;  %v2564_v21 = vpop.f32.mrb[67].mxu1 }
 0xaca   : > { %2612 = vst.msk [vmem:[%s4809_s24 + $0x20] sm:$0xff] %vm271_vm0, %v2562_v51  ;;  %v2565_v59 = vadd.f32 %v2738_v46, %v2564_v21 }
 0xacb   : > { %2615 = vst.msk [vmem:[%s4809_s24 + $0x38] sm:$0xff] %vm271_vm0, %v2573_v53 }
 0xacc   : > { %2613 = vst.msk [vmem:[%s4809_s24 + $0x28] sm:$0xff] %vm271_vm0, %v2565_v59 }
 0xae3   : > { %v3191_v47 = vpop.f32.mrb[68].mxu1 }
 0xae4   : > { %v2586_v24 = vadd.f32 %v3191_v47, %v2738_v46  ;;  %v2577_v41 = vpop.f32.mrb[69].mxu1 }
 0xae5   : > { %v2578_v16 = vadd.f32 %v2738_v46, %v2577_v41  ;;  %v3192_v29 = vpop.f32.mrb[70].mxu1 }
 0xae6   : > { %2618 = vst.msk [vmem:[%s4809_s24 + $0x50] sm:$0xff] %vm271_vm0, %v2586_v24  ;;  %v2589_v44 = vadd.f32 %v3192_v29, %v2738_v46  ;;  %v2580_v25 = vpop.f32.mrb[71].mxu1 }
 0xae7   : > { %2616 = vst.msk [vmem:[%s4809_s24 + $0x40] sm:$0xff] %vm271_vm0, %v2578_v16  ;;  %v2581_v8 = vadd.f32 %v2738_v46, %v2580_v25 }
 0xae8   : > { %2619 = vst.msk [vmem:[%s4809_s24 + $0x58] sm:$0xff] %vm271_vm0, %v2589_v44 }
 0xae9   : > { %2617 = vst.msk [vmem:[%s4809_s24 + $0x48] sm:$0xff] %vm271_vm0, %v2581_v8 }
 0xaeb   : > { %v3195_v34 = vpop.f32.mrb[72].mxu1 }
 0xaec   : > { %v2602_v45 = vadd.f32 %v3195_v34, %v2738_v46  ;;  %v2593_v28 = vpop.f32.mrb[73].mxu1 }
 0xaed   : > { %v2594_v19 = vadd.f32 %v2738_v46, %v2593_v28  ;;  %v3196_v14 = vpop.f32.mrb[74].mxu1 }
 0xaee   : > { %2622 = vst.msk [vmem:[%s4809_s24 + $0x70] sm:$0xff] %vm271_vm0, %v2602_v45  ;;  %v2605_v42 = vadd.f32 %v3196_v14, %v2738_v46  ;;  %v2596_v31 = vpop.f32.mrb[75].mxu1 }
 0xaef   : > { %2620 = vst.msk [vmem:[%s4809_s24 + $0x60] sm:$0xff] %vm271_vm0, %v2594_v19  ;;  %v2597_v23 = vadd.f32 %v2738_v46, %v2596_v31 }
 0xaf0   : > { %2623 = vst.msk [vmem:[%s4809_s24 + $0x78] sm:$0xff] %vm271_vm0, %v2605_v42 }
 0xaf1   : > { %2621 = vst.msk [vmem:[%s4809_s24 + $0x68] sm:$0xff] %vm271_vm0, %v2597_v23 }
 0xaf2 PF: > { %s14_s15 = sadd.s32 1, %s3541_s15  }
 0xaf3   : > { %p11_p4 = scmp.ge.s32.totalorder %s14_s15, 4  }
 0xaf5   :  { %13 = sbr.rel (!%p11_p4) target bundleno = 1 (0x1), region = 66 }

</bundles_post_ra>
